<compile_context>
chip_gen: v6e
topology: v6e:2x2x1
jax: 0.10.0
libtpu: 0.0.40
codegen_flags: <defaults>
</compile_context>

<pallas_src>
import functools
import math

import jax
import jax.numpy as jnp
from jax import lax
from jax.experimental import pallas as pl
from jax.experimental.pallas import tpu as pltpu

_BF16 = jnp.bfloat16


# ----------------------------------------------------------------------------
# In-kernel helpers
# ----------------------------------------------------------------------------
def _l2_normalize_rows(v):
    """F.normalize(v, p=2, dim=1)."""
    ss = jnp.sum(v * v, axis=1, keepdims=True)
    return v * lax.rsqrt(jnp.maximum(ss, 1e-24))


def _qkT(q, k):
    """q @ k.T without materializing a transpose (contract last dims)."""
    return lax.dot_general(q, k, (((1,), (1,)), ((), ())),
                           preferred_element_type=jnp.float32)


def _fuse(gn, ln, fusion):
    if fusion == 'add':
        return gn + ln
    if fusion == 'mult':
        return gn * ln
    if fusion == 'avg':
        return (gn + ln) * 0.5
    if fusion == 'max':
        return jnp.maximum(gn, ln)
    raise ValueError(f"Unsupported fusion method: {fusion!r}")


# ----------------------------------------------------------------------------
# Pallas kernels
# ----------------------------------------------------------------------------
def _global_qkv_kernel(x_ref, wq_ref, wk_ref, wv_ref,
                       q_ref, k_ref, v_ref, xb_ref, *, heads):
    """Prologue: global Q/K/V projections (bf16) + bf16 copy of x, row-tiled."""
    x = x_ref[...].astype(_BF16)
    xb_ref[...] = x
    for h in range(heads):                     # static, unrolled
        q_ref[h] = jnp.dot(x, wq_ref[h], preferred_element_type=jnp.float32).astype(_BF16)
        k_ref[h] = jnp.dot(x, wk_ref[h], preferred_element_type=jnp.float32).astype(_BF16)
        v_ref[h] = jnp.dot(x, wv_ref[h], preferred_element_type=jnp.float32).astype(_BF16)


def _fused_segment_kernel(xb_ref, gq_ref, gk_ref, gv_ref, gwo_ref,
                          lwq_ref, lwk_ref, lwv_ref, lwo_ref,
                          *outs_and_scratch,
                          g_heads, l_heads, q_tile, fusion, write_attn):
    """One grid step == one query row-tile of one segment.

    Global attention rows (this tile's queries vs the precomputed full K/V),
    local attention (this tile's queries vs the segment, with K/V cached in
    VMEM scratch across tiles), F.normalize + fusion, lane-dense output write.
    """
    if write_attn:
        y_ref, attn_ref, lk_sc, lv_sc = outs_and_scratch
    else:
        y_ref, lk_sc, lv_sc = outs_and_scratch
        attn_ref = None

    qi = pl.program_id(1)
    row0 = pl.multiple_of(qi * q_tile, q_tile)

    x_seg = xb_ref[...]                               # (seg_size, Din) bf16
    x_q = xb_ref[pl.ds(row0, q_tile), :]              # (q_tile, Din)   bf16

    # ---- local K/V: compute once per segment, reuse for every query tile ----
    @pl.when(qi == 0)
    def _():
        for h in range(l_heads):
            lk_sc[h] = jnp.dot(x_seg, lwk_ref[h],
                               preferred_element_type=jnp.float32).astype(_BF16)
            lv_sc[h] = jnp.dot(x_seg, lwv_ref[h],
                               preferred_element_type=jnp.float32).astype(_BF16)

    # ---- global attention rows (queries = this tile, keys/values = full T) ----
    g_acc = jnp.zeros(y_ref.shape, jnp.float32)
    attn_last = None
    for h in range(g_heads):
        qh = gq_ref[h]                                # (q_tile, gdh) bf16 (prologue)
        kh = gk_ref[h]                                # (T, gdh)
        vh = gv_ref[h]                                # (T, gdh)
        e = _qkT(qh, kh)                              # (q_tile, T) f32
        e = e - jnp.max(e, axis=-1, keepdims=True)    # stable softmax
        p = jnp.exp(e)                                # f32 exp (see bf16-exp TODO above)
        denom = jnp.sum(p, axis=-1, keepdims=True)
        yh = jnp.dot(p.astype(_BF16), vh, preferred_element_type=jnp.float32)
        yh = yh * pl.reciprocal(denom, approx=True)   # normalize AFTER PV: O(S*dh)
        g_acc = g_acc + jnp.dot(yh.astype(_BF16), gwo_ref[h],
                                preferred_element_type=jnp.float32)
        if write_attn and h == g_heads - 1:
            attn_last = p * (1.0 / denom)             # exact softmax for returned map

    if write_attn:
        attn_ref[...] = attn_last.astype(attn_ref.dtype)

    # ---- local attention (queries = this tile, keys/values = this segment) ----
    l_acc = jnp.zeros(y_ref.shape, jnp.float32)
    for h in range(l_heads):
        qh = jnp.dot(x_q, lwq_ref[h],
                     preferred_element_type=jnp.float32).astype(_BF16)
        kh = lk_sc[h]                                 # (seg_size, ldh) bf16
        vh = lv_sc[h]
        e = _qkT(qh, kh)                              # (q_tile, seg_size) f32
        e = e - jnp.max(e, axis=-1, keepdims=True)
        p = jnp.exp(e)
        denom = jnp.sum(p, axis=-1, keepdims=True)
        yh = jnp.dot(p.astype(_BF16), vh, preferred_element_type=jnp.float32)
        yh = yh * pl.reciprocal(denom, approx=True)
        l_acc = l_acc + jnp.dot(yh.astype(_BF16), lwo_ref[h],
                                preferred_element_type=jnp.float32)

    # ---- F.normalize(p=2, dim=1) on both + fusion ----
    y = _fuse(_l2_normalize_rows(g_acc), _l2_normalize_rows(l_acc), fusion)
    y_ref[...] = y.astype(y_ref.dtype)


def _global_only_kernel(x_ref, wq_ref, wk_ref, wv_ref, wo_ref,
                        y_ref, attn_ref, *, heads):
    """MultiAttention.forward when num_segments/fusion is None (global only)."""
    x = x_ref[...].astype(_BF16)
    acc = jnp.zeros(y_ref.shape, jnp.float32)
    attn = None
    for h in range(heads):
        q = jnp.dot(x, wq_ref[h], preferred_element_type=jnp.float32).astype(_BF16)
        k = jnp.dot(x, wk_ref[h], preferred_element_type=jnp.float32).astype(_BF16)
        v = jnp.dot(x, wv_ref[h], preferred_element_type=jnp.float32).astype(_BF16)
        e = _qkT(q, k)
        e = e - jnp.max(e, axis=-1, keepdims=True)
        p = jnp.exp(e)
        denom = jnp.sum(p, axis=-1, keepdims=True)
        yh = jnp.dot(p.astype(_BF16), v, preferred_element_type=jnp.float32)
        yh = yh * pl.reciprocal(denom, approx=True)
        acc = acc + jnp.dot(yh.astype(_BF16), wo_ref[h],
                            preferred_element_type=jnp.float32)
        if h == heads - 1:
            attn = p * (1.0 / denom)
    y_ref[...] = acc.astype(y_ref.dtype)
    attn_ref[...] = attn.astype(attn_ref.dtype)


# ----------------------------------------------------------------------------
# Wrappers
# ----------------------------------------------------------------------------
_VMEM_SPEC = pl.BlockSpec(memory_space=pltpu.MemorySpace.VMEM)


def pack_params(params):
    """One-time weight repacking (outside the per-call jit path): per-head
    x@W layouts, bf16 MXU operand dtype."""
    g_wq, g_wk, g_wv, g_wo = params['global']          # (gh,Din,gdh)x3, (gh*gdh,Din)
    gh, din, gdh = g_wq.shape
    packed = {
        'g_wq': g_wq.astype(_BF16),
        'g_wk': g_wk.astype(_BF16),
        'g_wv': g_wv.astype(_BF16),
        'g_wo': g_wo.reshape(gh, gdh, din).astype(_BF16),
    }
    locals_ = params.get('local') or []
    if locals_:
        lh, _, ldh = locals_[0][0].shape
        packed['l_wq'] = jnp.stack([p[0] for p in locals_]).astype(_BF16)  # (nseg,lh,Din,ldh)
        packed['l_wk'] = jnp.stack([p[1] for p in locals_]).astype(_BF16)
        packed['l_wv'] = jnp.stack([p[2] for p in locals_]).astype(_BF16)
        packed['l_wo'] = jnp.stack([p[3].reshape(lh, ldh, din)
                                    for p in locals_]).astype(_BF16)       # (nseg,lh,ldh,Din)
    return packed


def _nbytes(shape, dtype):
    return math.prod(shape) * jnp.dtype(dtype).itemsize


def multi_attention(x, packed, num_segments, fusion, *, q_tile=None,
                    write_attn=True, attn_dtype=jnp.float32):
    """MultiAttention.forward: prologue (global Q/K/V) + fused per-segment call."""
    T, din = x.shape
    gh, _, gdh = packed['g_wq'].shape

    if num_segments is None or fusion is None:
        return pl.pallas_call(
            functools.partial(_global_only_kernel, heads=gh),
            out_shape=(jax.ShapeDtypeStruct((T, din), x.dtype),
                       jax.ShapeDtypeStruct((T, T), attn_dtype)),
            in_specs=[_VMEM_SPEC] * 5,
            out_specs=(_VMEM_SPEC, _VMEM_SPEC),
        )(x, packed['g_wq'], packed['g_wk'], packed['g_wv'], packed['g_wo'])

    fusion = fusion.lower()
    if fusion not in ('add', 'mult', 'avg', 'max'):
        raise ValueError(f"Fusion method must be add/mult/avg/max, got {fusion!r}")

    seg = math.ceil(T / num_segments)
    assert seg * num_segments == T, "T must be divisible by num_segments"

    nseg_w, lh, _, ldh = packed['l_wq'].shape
    assert nseg_w == num_segments

    if q_tile is None:
        q_tile = seg if seg <= 128 else 128
    if seg % q_tile != 0:
        q_tile = seg
    num_q = seg // q_tile

    resident = dict(pipeline_mode=pl.Buffered(buffer_count=1))  # grid-invariant operands

    # ---- prologue: global Q/K/V over the whole sequence, computed once ----
    gq, gk, gv, xb = pl.pallas_call(
        functools.partial(_global_qkv_kernel, heads=gh),
        out_shape=(jax.ShapeDtypeStruct((gh, T, gdh), _BF16),
                   jax.ShapeDtypeStruct((gh, T, gdh), _BF16),
                   jax.ShapeDtypeStruct((gh, T, gdh), _BF16),
                   jax.ShapeDtypeStruct((T, din), _BF16)),
        grid=(num_segments,),
        in_specs=[
            pl.BlockSpec((seg, din), lambda i: (i, 0)),
            pl.BlockSpec((gh, din, gdh), lambda i: (0, 0, 0), **resident),
            pl.BlockSpec((gh, din, gdh), lambda i: (0, 0, 0), **resident),
            pl.BlockSpec((gh, din, gdh), lambda i: (0, 0, 0), **resident),
        ],
        out_specs=(
            pl.BlockSpec((gh, seg, gdh), lambda i: (0, i, 0)),
            pl.BlockSpec((gh, seg, gdh), lambda i: (0, i, 0)),
            pl.BlockSpec((gh, seg, gdh), lambda i: (0, i, 0)),
            pl.BlockSpec((seg, din), lambda i: (i, 0)),
        ),
        compiler_params=pltpu.CompilerParams(dimension_semantics=("parallel",)),
    )(x, packed['g_wq'], packed['g_wk'], packed['g_wv'])

    # ---- main fused call: grid = (segment, query tile within segment) ----
    out_shapes = [jax.ShapeDtypeStruct((T, din), x.dtype)]
    out_specs = [pl.BlockSpec((q_tile, din), lambda s, qi: (s * num_q + qi, 0))]
    if write_attn:
        out_shapes.append(jax.ShapeDtypeStruct((T, T), attn_dtype))
        out_specs.append(pl.BlockSpec((q_tile, T), lambda s, qi: (s * num_q + qi, 0)))

    # VMEM budget from the actual block sizes (+ score temporaries + slack).
    est = (2 * _nbytes((seg, din), _BF16)                 # x (segment, double buffered)
           + 2 * _nbytes((gh, q_tile, gdh), _BF16)        # global Q tile
           + 2 * _nbytes((gh, T, gdh), _BF16)             # global K + V (single buffered)
           + _nbytes((gh, gdh, din), _BF16)               # global Wout (single buffered)
           + 2 * (3 * _nbytes((lh, din, ldh), _BF16)
                  + _nbytes((lh, ldh, din), _BF16))       # local weights
           + 2 * _nbytes((q_tile, din), x.dtype)          # y tile
           + (2 * _nbytes((q_tile, T), attn_dtype) if write_attn else 0)
           + 2 * _nbytes((lh, seg, ldh), _BF16)           # local K/V scratch
           + 4 * _nbytes((q_tile, T), jnp.float32)        # score / exp temporaries
           + (4 << 20))
    vmem_limit = int(min(56 << 20, max(32 << 20, est)))

    flops = (4 * T * T * gh * gdh + 2 * T * gh * gdh * din
             + 6 * T * din * lh * ldh + 4 * T * seg * lh * ldh + 2 * T * lh * ldh * din)
    transc = gh * T * T + lh * T * seg
    bytes_acc = (_nbytes((T, din), _BF16) + 3 * _nbytes((gh, T, gdh), _BF16)
                 + _nbytes((gh, gdh, din), _BF16)
                 + num_segments * (3 * _nbytes((lh, din, ldh), _BF16)
                                   + _nbytes((lh, ldh, din), _BF16))
                 + _nbytes((T, din), x.dtype)
                 + (_nbytes((T, T), attn_dtype) if write_attn else 0))

    outs = pl.pallas_call(
        functools.partial(_fused_segment_kernel, g_heads=gh, l_heads=lh,
                          q_tile=q_tile, fusion=fusion, write_attn=write_attn),
        out_shape=tuple(out_shapes),
        grid=(num_segments, num_q),
        in_specs=[
            pl.BlockSpec((seg, din), lambda s, qi: (s, 0)),                    # x (segment, bf16)
            pl.BlockSpec((gh, q_tile, gdh), lambda s, qi: (0, s * num_q + qi, 0)),  # global Q tile
            pl.BlockSpec((gh, T, gdh), lambda s, qi: (0, 0, 0), **resident),   # global K (resident)
            pl.BlockSpec((gh, T, gdh), lambda s, qi: (0, 0, 0), **resident),   # global V (resident)
            pl.BlockSpec((gh, gdh, din), lambda s, qi: (0, 0, 0), **resident), # global Wout
            pl.BlockSpec((None, lh, din, ldh), lambda s, qi: (s, 0, 0, 0)),    # local Wq[s]
            pl.BlockSpec((None, lh, din, ldh), lambda s, qi: (s, 0, 0, 0)),    # local Wk[s]
            pl.BlockSpec((None, lh, din, ldh), lambda s, qi: (s, 0, 0, 0)),    # local Wv[s]
            pl.BlockSpec((None, lh, ldh, din), lambda s, qi: (s, 0, 0, 0)),    # local Wout[s]
        ],
        out_specs=tuple(out_specs),
        scratch_shapes=[pltpu.VMEM((lh, seg, ldh), _BF16),   # cached local K
                        pltpu.VMEM((lh, seg, ldh), _BF16)],  # cached local V
        compiler_params=pltpu.CompilerParams(
            dimension_semantics=("parallel", "arbitrary"),
            vmem_limit_bytes=vmem_limit),
        cost_estimate=pl.CostEstimate(flops=int(flops), transcendentals=int(transc),
                                      bytes_accessed=int(bytes_acc)),
    )(xb, gq, gk, gv, packed['g_wo'],
      packed['l_wq'], packed['l_wk'], packed['l_wv'], packed['l_wo'])

    if write_attn:
        return outs[0], outs[1]
    return outs[0], None


# ----------------------------------------------------------------------------
# Reference (mirrors the PyTorch code; matmul operands cast to bf16 to match
# the kernel's MXU precision, accumulation in f32)
# ----------------------------------------------------------------------------
def _mm(a, b):
    return jnp.dot(a.astype(_BF16), b.astype(_BF16), preferred_element_type=jnp.float32)


def _self_attention_ref(x, wq, wk, wv, wo):
    outs, a = [], None
    for h in range(wq.shape[0]):
        q, k, v = _mm(x, wq[h]), _mm(x, wk[h]), _mm(x, wv[h])
        a = jax.nn.softmax(_mm(q, k.T), axis=-1)
        outs.append(_mm(a, v))
    return _mm(jnp.concatenate(outs, axis=1), wo), a


def _multi_attention_ref(x, params, num_segments, fusion):
    wv_, attn = _self_attention_ref(x, *params['global'])
    if num_segments is not None and fusion is not None:
        segment_size = math.ceil(x.shape[0] / num_segments)
        pieces = []
        for s in range(num_segments):
            l, r = s * segment_size, min((s + 1) * segment_size, x.shape[0])
            lv, _ = _self_attention_ref(x[l:r], *params['local'][s])
            g = wv_[l:r]
            gn = g / jnp.maximum(jnp.linalg.norm(g, axis=1, keepdims=True), 1e-12)
            ln = lv / jnp.maximum(jnp.linalg.norm(lv, axis=1, keepdims=True), 1e-12)
            if fusion == 'add':
                f = gn + ln
            elif fusion == 'mult':
                f = gn * ln
            elif fusion == 'avg':
                f = (gn + ln) * 0.5
            else:
                f = jnp.maximum(gn, ln)
            pieces.append(f)
        wv_ = jnp.concatenate(pieces, axis=0)
    return wv_, attn


# ----------------------------------------------------------------------------
# Deterministic parameter init + run
# ----------------------------------------------------------------------------
def _init_params(key, input_size, output_size, num_segments):
    def lin(k, fin, fout):
        return jax.random.normal(k, (fin, fout), jnp.float32) * 0.1

    keys = iter(jax.random.split(key, 64))
    gh, gdh = 1, output_size // 1
    g_wq = jnp.stack([lin(next(keys), input_size, gdh) for _ in range(gh)])
    g_wk = jnp.stack([lin(next(keys), input_size, gdh) for _ in range(gh)])
    g_wv = jnp.stack([lin(next(keys), input_size, gdh) for _ in range(gh)])
    g_wo = lin(next(keys), output_size, input_size)

    locals_ = []
    if num_segments is not None:
        lh = 4
        ldh = (output_size // num_segments) // lh
        for _ in range(num_segments):
            l_wq = jnp.stack([lin(next(keys), input_size, ldh) for _ in range(lh)])
            l_wk = jnp.stack([lin(next(keys), input_size, ldh) for _ in range(lh)])
            l_wv = jnp.stack([lin(next(keys), input_size, ldh) for _ in range(lh)])
            l_wo = lin(next(keys), lh * ldh, input_size)
            locals_.append((l_wq, l_wk, l_wv, l_wo))
    return {'global': (g_wq, g_wk, g_wv, g_wo), 'local': locals_}


if __name__ == "__main__":
    T = 64                 # sequence length (video frames)
    INPUT_SIZE = 64        # feature size (small stand-in for 1024)
    OUTPUT_SIZE = 64
    NUM_SEGMENTS = 2       # seg_size = 32
    FUSION = 'add'

    key = jax.random.PRNGKey(0)
    kx, kp = jax.random.split(key)
    x = jax.random.normal(kx, (T, INPUT_SIZE), jnp.float32)
    params = _init_params(kp, INPUT_SIZE, OUTPUT_SIZE, NUM_SEGMENTS)

    packed = pack_params(params)   # one-time repack (bf16, per-head layout)

    run = jax.jit(functools.partial(multi_attention,
                                    num_segments=NUM_SEGMENTS, fusion=FUSION,
                                    q_tile=16, write_attn=True))
    y, attn = jax.block_until_ready(run(x, packed))

    y_ref, attn_ref = _multi_attention_ref(x, params, NUM_SEGMENTS, FUSION)
    assert y.shape == (T, INPUT_SIZE) and attn.shape == (T, T)
    # Returned attn map uses an exact softmax denominator: rows sum to 1.
    assert jnp.allclose(jnp.sum(attn, axis=-1), 1.0, atol=2e-3), "attn rows must sum to 1"
    assert jnp.allclose(y, y_ref, atol=1e-2, rtol=1e-2), "weighted_value mismatch"
    assert jnp.allclose(attn, attn_ref, atol=1e-2, rtol=1e-2), "attn_weights mismatch"

    print("KERNEL_OK")
</pallas_src>

<mosaic_0001>
module attributes {stable_mosaic.version = 11 : i64} {
  func.func @_global_qkv_kernel(%arg0: i32, %arg1: memref<32x64xf32, #tpu.memory_space<vmem>>, %arg2: memref<1x64x64xbf16, #tpu.memory_space<vmem>>, %arg3: memref<1x64x64xbf16, #tpu.memory_space<vmem>>, %arg4: memref<1x64x64xbf16, #tpu.memory_space<vmem>>, %arg5: memref<1x32x64xbf16, #tpu.memory_space<vmem>>, %arg6: memref<1x32x64xbf16, #tpu.memory_space<vmem>>, %arg7: memref<1x32x64xbf16, #tpu.memory_space<vmem>>, %arg8: memref<32x64xbf16, #tpu.memory_space<vmem>>) attributes {dimension_semantics = [#tpu.dimension_semantics<parallel>], iteration_bounds = array<i64: 2>, scalar_prefetch = 0 : i64, scratch_operands = 0 : i64, tpu.core_type = #tpu.core_type<tc>, window_params = [{transform_indices = @transform_0, window_bounds = array<i64: 32, 64>}, {pipeline_mode = #tpu.pipeline_mode<synchronous>, transform_indices = @transform_1, window_bounds = array<i64: 1, 64, 64>}, {pipeline_mode = #tpu.pipeline_mode<synchronous>, transform_indices = @transform_2, window_bounds = array<i64: 1, 64, 64>}, {pipeline_mode = #tpu.pipeline_mode<synchronous>, transform_indices = @transform_3, window_bounds = array<i64: 1, 64, 64>}, {transform_indices = @transform_4, window_bounds = array<i64: 1, 32, 64>}, {transform_indices = @transform_5, window_bounds = array<i64: 1, 32, 64>}, {transform_indices = @transform_6, window_bounds = array<i64: 1, 32, 64>}, {transform_indices = @transform_7, window_bounds = array<i64: 32, 64>}]} {
    %c0 = arith.constant 0 : index
    %c0_0 = arith.constant 0 : index
    %0 = vector.load %arg1[%c0, %c0_0] : memref<32x64xf32, #tpu.memory_space<vmem>>, vector<32x64xf32>
    %1 = arith.truncf %0 : vector<32x64xf32> to vector<32x64xbf16>
    %c0_1 = arith.constant 0 : index
    %c0_2 = arith.constant 0 : index
    %2 = vector.load %arg8[%c0_1, %c0_2] : memref<32x64xbf16, #tpu.memory_space<vmem>>, vector<32x64xbf16>
    tpu.vector_store %arg8[%c0_1, %c0_2], %1 {strides = array<i32>} : memref<32x64xbf16, #tpu.memory_space<vmem>>, vector<32x64xbf16>,
    %c0_3 = arith.constant 0 : index
    %c0_4 = arith.constant 0 : index
    %c0_5 = arith.constant 0 : index
    %3 = vector.load %arg2[%c0_3, %c0_4, %c0_5] : memref<1x64x64xbf16, #tpu.memory_space<vmem>>, vector<1x64x64xbf16>
    %4 = vector.shape_cast %3 : vector<1x64x64xbf16> to vector<64x64xbf16>
    %cst = arith.constant dense<0.000000e+00> : vector<32x64xf32>
    %5 = tpu.matmul %1, %4, %cst {dimension_numbers = #tpu.dot_dimension_numbers<[1], [0], [0], [1], [0, 0, 1, 1], [], []>} : vector<32x64xbf16>, vector<64x64xbf16>, vector<32x64xf32> -> vector<32x64xf32>
    %6 = arith.truncf %5 : vector<32x64xf32> to vector<32x64xbf16>
    %c0_6 = arith.constant 0 : index
    %c0_7 = arith.constant 0 : index
    %c0_8 = arith.constant 0 : index
    %7 = vector.load %arg5[%c0_6, %c0_7, %c0_8] : memref<1x32x64xbf16, #tpu.memory_space<vmem>>, vector<1x32x64xbf16>
    %8 = vector.shape_cast %7 : vector<1x32x64xbf16> to vector<32x64xbf16>
    %9 = vector.shape_cast %6 : vector<32x64xbf16> to vector<1x32x64xbf16>
    tpu.vector_store %arg5[%c0_6, %c0_7, %c0_8], %9 {strides = array<i32>} : memref<1x32x64xbf16, #tpu.memory_space<vmem>>, vector<1x32x64xbf16>,
    %c0_9 = arith.constant 0 : index
    %c0_10 = arith.constant 0 : index
    %c0_11 = arith.constant 0 : index
    %10 = vector.load %arg3[%c0_9, %c0_10, %c0_11] : memref<1x64x64xbf16, #tpu.memory_space<vmem>>, vector<1x64x64xbf16>
    %11 = vector.shape_cast %10 : vector<1x64x64xbf16> to vector<64x64xbf16>
    %cst_12 = arith.constant dense<0.000000e+00> : vector<32x64xf32>
    %12 = tpu.matmul %1, %11, %cst_12 {dimension_numbers = #tpu.dot_dimension_numbers<[1], [0], [0], [1], [0, 0, 1, 1], [], []>} : vector<32x64xbf16>, vector<64x64xbf16>, vector<32x64xf32> -> vector<32x64xf32>
    %13 = arith.truncf %12 : vector<32x64xf32> to vector<32x64xbf16>
    %c0_13 = arith.constant 0 : index
    %c0_14 = arith.constant 0 : index
    %c0_15 = arith.constant 0 : index
    %14 = vector.load %arg6[%c0_13, %c0_14, %c0_15] : memref<1x32x64xbf16, #tpu.memory_space<vmem>>, vector<1x32x64xbf16>
    %15 = vector.shape_cast %14 : vector<1x32x64xbf16> to vector<32x64xbf16>
    %16 = vector.shape_cast %13 : vector<32x64xbf16> to vector<1x32x64xbf16>
    tpu.vector_store %arg6[%c0_13, %c0_14, %c0_15], %16 {strides = array<i32>} : memref<1x32x64xbf16, #tpu.memory_space<vmem>>, vector<1x32x64xbf16>,
    %c0_16 = arith.constant 0 : index
    %c0_17 = arith.constant 0 : index
    %c0_18 = arith.constant 0 : index
    %17 = vector.load %arg4[%c0_16, %c0_17, %c0_18] : memref<1x64x64xbf16, #tpu.memory_space<vmem>>, vector<1x64x64xbf16>
    %18 = vector.shape_cast %17 : vector<1x64x64xbf16> to vector<64x64xbf16>
    %cst_19 = arith.constant dense<0.000000e+00> : vector<32x64xf32>
    %19 = tpu.matmul %1, %18, %cst_19 {dimension_numbers = #tpu.dot_dimension_numbers<[1], [0], [0], [1], [0, 0, 1, 1], [], []>} : vector<32x64xbf16>, vector<64x64xbf16>, vector<32x64xf32> -> vector<32x64xf32>
    %20 = arith.truncf %19 : vector<32x64xf32> to vector<32x64xbf16>
    %c0_20 = arith.constant 0 : index
    %c0_21 = arith.constant 0 : index
    %c0_22 = arith.constant 0 : index
    %21 = vector.load %arg7[%c0_20, %c0_21, %c0_22] : memref<1x32x64xbf16, #tpu.memory_space<vmem>>, vector<1x32x64xbf16>
    %22 = vector.shape_cast %21 : vector<1x32x64xbf16> to vector<32x64xbf16>
    %23 = vector.shape_cast %20 : vector<32x64xbf16> to vector<1x32x64xbf16>
    tpu.vector_store %arg7[%c0_20, %c0_21, %c0_22], %23 {strides = array<i32>} : memref<1x32x64xbf16, #tpu.memory_space<vmem>>, vector<1x32x64xbf16>,
    return
  }
  func.func @transform_0(%arg0: i32) -> (i32, i32) {
    %c0_i32 = arith.constant 0 : i32
    %c0_i32_0 = arith.constant 0 : i32
    return %arg0, %c0_i32 : i32, i32
  }
  func.func @transform_1(%arg0: i32) -> (i32, i32, i32) {
    %c0_i32 = arith.constant 0 : i32
    %c0_i32_0 = arith.constant 0 : i32
    %c0_i32_1 = arith.constant 0 : i32
    %c0_i32_2 = arith.constant 0 : i32
    return %c0_i32, %c0_i32_0, %c0_i32_1 : i32, i32, i32
  }
  func.func @transform_2(%arg0: i32) -> (i32, i32, i32) {
    %c0_i32 = arith.constant 0 : i32
    %c0_i32_0 = arith.constant 0 : i32
    %c0_i32_1 = arith.constant 0 : i32
    %c0_i32_2 = arith.constant 0 : i32
    return %c0_i32, %c0_i32_0, %c0_i32_1 : i32, i32, i32
  }
  func.func @transform_3(%arg0: i32) -> (i32, i32, i32) {
    %c0_i32 = arith.constant 0 : i32
    %c0_i32_0 = arith.constant 0 : i32
    %c0_i32_1 = arith.constant 0 : i32
    %c0_i32_2 = arith.constant 0 : i32
    return %c0_i32, %c0_i32_0, %c0_i32_1 : i32, i32, i32
  }
  func.func @transform_4(%arg0: i32) -> (i32, i32, i32) {
    %c0_i32 = arith.constant 0 : i32
    %c0_i32_0 = arith.constant 0 : i32
    %c0_i32_1 = arith.constant 0 : i32
    return %c0_i32, %arg0, %c0_i32_0 : i32, i32, i32
  }
  func.func @transform_5(%arg0: i32) -> (i32, i32, i32) {
    %c0_i32 = arith.constant 0 : i32
    %c0_i32_0 = arith.constant 0 : i32
    %c0_i32_1 = arith.constant 0 : i32
    return %c0_i32, %arg0, %c0_i32_0 : i32, i32, i32
  }
  func.func @transform_6(%arg0: i32) -> (i32, i32, i32) {
    %c0_i32 = arith.constant 0 : i32
    %c0_i32_0 = arith.constant 0 : i32
    %c0_i32_1 = arith.constant 0 : i32
    return %c0_i32, %arg0, %c0_i32_0 : i32, i32, i32
  }
  func.func @transform_7(%arg0: i32) -> (i32, i32) {
    %c0_i32 = arith.constant 0 : i32
    %c0_i32_0 = arith.constant 0 : i32
    return %arg0, %c0_i32 : i32, i32
  }
}

module attributes {stable_mosaic.version = 11 : i64} {
  func.func @_fused_segment_kernel(%arg0: i32, %arg1: i32, %arg2: memref<32x64xbf16, #tpu.memory_space<vmem>>, %arg3: memref<1x16x64xbf16, #tpu.memory_space<vmem>>, %arg4: memref<1x64x64xbf16, #tpu.memory_space<vmem>>, %arg5: memref<1x64x64xbf16, #tpu.memory_space<vmem>>, %arg6: memref<1x64x64xbf16, #tpu.memory_space<vmem>>, %arg7: memref<1x4x64x8xbf16, #tpu.memory_space<vmem>>, %arg8: memref<1x4x64x8xbf16, #tpu.memory_space<vmem>>, %arg9: memref<1x4x64x8xbf16, #tpu.memory_space<vmem>>, %arg10: memref<1x4x8x64xbf16, #tpu.memory_space<vmem>>, %arg11: memref<16x64xf32, #tpu.memory_space<vmem>>, %arg12: memref<16x64xf32, #tpu.memory_space<vmem>>, %arg13: memref<4x32x8xbf16, #tpu.memory_space<vmem>>, %arg14: memref<4x32x8xbf16, #tpu.memory_space<vmem>>) attributes {dimension_semantics = [#tpu.dimension_semantics<parallel>, #tpu.dimension_semantics<arbitrary>], iteration_bounds = array<i64: 2, 2>, scalar_prefetch = 0 : i64, scratch_operands = 2 : i64, tpu.core_type = #tpu.core_type<tc>, window_params = [{transform_indices = @transform_0, window_bounds = array<i64: 32, 64>}, {transform_indices = @transform_1, window_bounds = array<i64: 1, 16, 64>}, {pipeline_mode = #tpu.pipeline_mode<synchronous>, transform_indices = @transform_2, window_bounds = array<i64: 1, 64, 64>}, {pipeline_mode = #tpu.pipeline_mode<synchronous>, transform_indices = @transform_3, window_bounds = array<i64: 1, 64, 64>}, {pipeline_mode = #tpu.pipeline_mode<synchronous>, transform_indices = @transform_4, window_bounds = array<i64: 1, 64, 64>}, {transform_indices = @transform_5, window_bounds = array<i64: 1, 4, 64, 8>}, {transform_indices = @transform_6, window_bounds = array<i64: 1, 4, 64, 8>}, {transform_indices = @transform_7, window_bounds = array<i64: 1, 4, 64, 8>}, {transform_indices = @transform_8, window_bounds = array<i64: 1, 4, 8, 64>}, {transform_indices = @transform_9, window_bounds = array<i64: 16, 64>}, {transform_indices = @transform_10, window_bounds = array<i64: 16, 64>}]} {
    %c16_i32 = arith.constant 16 : i32
    %0 = arith.muli %arg1, %c16_i32 : i32
    %1 = tpu.assume_multiple %0, 16 : i32
    %c0 = arith.constant 0 : index
    %c0_0 = arith.constant 0 : index
    %2 = vector.load %arg2[%c0, %c0_0] : memref<32x64xbf16, #tpu.memory_space<vmem>>, vector<32x64xbf16>
    %3 = arith.index_cast %1 : i32 to index
    %c0_1 = arith.constant 0 : index
    %4 = vector.load %arg2[%3, %c0_1] : memref<32x64xbf16, #tpu.memory_space<vmem>>, vector<16x64xbf16>
    %c0_i32 = arith.constant 0 : i32
    %5 = arith.cmpi eq, %arg1, %c0_i32 : i32
    %6 = arith.extui %5 : i1 to i32
    %c0_i32_2 = arith.constant 0 : i32
    %7 = arith.cmpi ne, %6, %c0_i32_2 : i32
    scf.if %7 {
      %c0_107 = arith.constant 0 : index
      %c0_108 = arith.constant 0 : index
      %c0_109 = arith.constant 0 : index
      %c0_110 = arith.constant 0 : index
      %161 = vector.load %arg8[%c0_107, %c0_108, %c0_109, %c0_110] : memref<1x4x64x8xbf16, #tpu.memory_space<vmem>>, vector<1x1x64x8xbf16>
      %162 = vector.shape_cast %161 : vector<1x1x64x8xbf16> to vector<64x8xbf16>
      %cst_111 = arith.constant dense<0.000000e+00> : vector<32x8xf32>
      %163 = tpu.matmul %2, %162, %cst_111 {dimension_numbers = #tpu.dot_dimension_numbers<[1], [0], [0], [1], [0, 0, 1, 1], [], []>} : vector<32x64xbf16>, vector<64x8xbf16>, vector<32x8xf32> -> vector<32x8xf32>
      %164 = arith.truncf %163 : vector<32x8xf32> to vector<32x8xbf16>
      %c0_112 = arith.constant 0 : index
      %c0_113 = arith.constant 0 : index
      %c0_114 = arith.constant 0 : index
      %165 = vector.load %arg13[%c0_112, %c0_113, %c0_114] : memref<4x32x8xbf16, #tpu.memory_space<vmem>>, vector<1x32x8xbf16>
      %166 = vector.shape_cast %165 : vector<1x32x8xbf16> to vector<32x8xbf16>
      %167 = vector.shape_cast %164 : vector<32x8xbf16> to vector<1x32x8xbf16>
      tpu.vector_store %arg13[%c0_112, %c0_113, %c0_114], %167 {strides = array<i32>} : memref<4x32x8xbf16, #tpu.memory_space<vmem>>, vector<1x32x8xbf16>,
      %c0_115 = arith.constant 0 : index
      %c0_116 = arith.constant 0 : index
      %c0_117 = arith.constant 0 : index
      %c0_118 = arith.constant 0 : index
      %168 = vector.load %arg9[%c0_115, %c0_116, %c0_117, %c0_118] : memref<1x4x64x8xbf16, #tpu.memory_space<vmem>>, vector<1x1x64x8xbf16>
      %169 = vector.shape_cast %168 : vector<1x1x64x8xbf16> to vector<64x8xbf16>
      %cst_119 = arith.constant dense<0.000000e+00> : vector<32x8xf32>
      %170 = tpu.matmul %2, %169, %cst_119 {dimension_numbers = #tpu.dot_dimension_numbers<[1], [0], [0], [1], [0, 0, 1, 1], [], []>} : vector<32x64xbf16>, vector<64x8xbf16>, vector<32x8xf32> -> vector<32x8xf32>
      %171 = arith.truncf %170 : vector<32x8xf32> to vector<32x8xbf16>
      %c0_120 = arith.constant 0 : index
      %c0_121 = arith.constant 0 : index
      %c0_122 = arith.constant 0 : index
      %172 = vector.load %arg14[%c0_120, %c0_121, %c0_122] : memref<4x32x8xbf16, #tpu.memory_space<vmem>>, vector<1x32x8xbf16>
      %173 = vector.shape_cast %172 : vector<1x32x8xbf16> to vector<32x8xbf16>
      %174 = vector.shape_cast %171 : vector<32x8xbf16> to vector<1x32x8xbf16>
      tpu.vector_store %arg14[%c0_120, %c0_121, %c0_122], %174 {strides = array<i32>} : memref<4x32x8xbf16, #tpu.memory_space<vmem>>, vector<1x32x8xbf16>,
      %c0_123 = arith.constant 0 : index
      %c1_124 = arith.constant 1 : index
      %c0_125 = arith.constant 0 : index
      %c0_126 = arith.constant 0 : index
      %175 = vector.load %arg8[%c0_123, %c1_124, %c0_125, %c0_126] : memref<1x4x64x8xbf16, #tpu.memory_space<vmem>>, vector<1x1x64x8xbf16>
      %176 = vector.shape_cast %175 : vector<1x1x64x8xbf16> to vector<64x8xbf16>
      %cst_127 = arith.constant dense<0.000000e+00> : vector<32x8xf32>
      %177 = tpu.matmul %2, %176, %cst_127 {dimension_numbers = #tpu.dot_dimension_numbers<[1], [0], [0], [1], [0, 0, 1, 1], [], []>} : vector<32x64xbf16>, vector<64x8xbf16>, vector<32x8xf32> -> vector<32x8xf32>
      %178 = arith.truncf %177 : vector<32x8xf32> to vector<32x8xbf16>
      %c1_128 = arith.constant 1 : index
      %c0_129 = arith.constant 0 : index
      %c0_130 = arith.constant 0 : index
      %179 = vector.load %arg13[%c1_128, %c0_129, %c0_130] : memref<4x32x8xbf16, #tpu.memory_space<vmem>>, vector<1x32x8xbf16>
      %180 = vector.shape_cast %179 : vector<1x32x8xbf16> to vector<32x8xbf16>
      %181 = vector.shape_cast %178 : vector<32x8xbf16> to vector<1x32x8xbf16>
      tpu.vector_store %arg13[%c1_128, %c0_129, %c0_130], %181 {strides = array<i32>} : memref<4x32x8xbf16, #tpu.memory_space<vmem>>, vector<1x32x8xbf16>,
      %c0_131 = arith.constant 0 : index
      %c1_132 = arith.constant 1 : index
      %c0_133 = arith.constant 0 : index
      %c0_134 = arith.constant 0 : index
      %182 = vector.load %arg9[%c0_131, %c1_132, %c0_133, %c0_134] : memref<1x4x64x8xbf16, #tpu.memory_space<vmem>>, vector<1x1x64x8xbf16>
      %183 = vector.shape_cast %182 : vector<1x1x64x8xbf16> to vector<64x8xbf16>
      %cst_135 = arith.constant dense<0.000000e+00> : vector<32x8xf32>
      %184 = tpu.matmul %2, %183, %cst_135 {dimension_numbers = #tpu.dot_dimension_numbers<[1], [0], [0], [1], [0, 0, 1, 1], [], []>} : vector<32x64xbf16>, vector<64x8xbf16>, vector<32x8xf32> -> vector<32x8xf32>
      %185 = arith.truncf %184 : vector<32x8xf32> to vector<32x8xbf16>
      %c1_136 = arith.constant 1 : index
      %c0_137 = arith.constant 0 : index
      %c0_138 = arith.constant 0 : index
      %186 = vector.load %arg14[%c1_136, %c0_137, %c0_138] : memref<4x32x8xbf16, #tpu.memory_space<vmem>>, vector<1x32x8xbf16>
      %187 = vector.shape_cast %186 : vector<1x32x8xbf16> to vector<32x8xbf16>
      %188 = vector.shape_cast %185 : vector<32x8xbf16> to vector<1x32x8xbf16>
      tpu.vector_store %arg14[%c1_136, %c0_137, %c0_138], %188 {strides = array<i32>} : memref<4x32x8xbf16, #tpu.memory_space<vmem>>, vector<1x32x8xbf16>,
      %c0_139 = arith.constant 0 : index
      %c2_140 = arith.constant 2 : index
      %c0_141 = arith.constant 0 : index
      %c0_142 = arith.constant 0 : index
      %189 = vector.load %arg8[%c0_139, %c2_140, %c0_141, %c0_142] : memref<1x4x64x8xbf16, #tpu.memory_space<vmem>>, vector<1x1x64x8xbf16>
      %190 = vector.shape_cast %189 : vector<1x1x64x8xbf16> to vector<64x8xbf16>
      %cst_143 = arith.constant dense<0.000000e+00> : vector<32x8xf32>
      %191 = tpu.matmul %2, %190, %cst_143 {dimension_numbers = #tpu.dot_dimension_numbers<[1], [0], [0], [1], [0, 0, 1, 1], [], []>} : vector<32x64xbf16>, vector<64x8xbf16>, vector<32x8xf32> -> vector<32x8xf32>
      %192 = arith.truncf %191 : vector<32x8xf32> to vector<32x8xbf16>
      %c2_144 = arith.constant 2 : index
      %c0_145 = arith.constant 0 : index
      %c0_146 = arith.constant 0 : index
      %193 = vector.load %arg13[%c2_144, %c0_145, %c0_146] : memref<4x32x8xbf16, #tpu.memory_space<vmem>>, vector<1x32x8xbf16>
      %194 = vector.shape_cast %193 : vector<1x32x8xbf16> to vector<32x8xbf16>
      %195 = vector.shape_cast %192 : vector<32x8xbf16> to vector<1x32x8xbf16>
      tpu.vector_store %arg13[%c2_144, %c0_145, %c0_146], %195 {strides = array<i32>} : memref<4x32x8xbf16, #tpu.memory_space<vmem>>, vector<1x32x8xbf16>,
      %c0_147 = arith.constant 0 : index
      %c2_148 = arith.constant 2 : index
      %c0_149 = arith.constant 0 : index
      %c0_150 = arith.constant 0 : index
      %196 = vector.load %arg9[%c0_147, %c2_148, %c0_149, %c0_150] : memref<1x4x64x8xbf16, #tpu.memory_space<vmem>>, vector<1x1x64x8xbf16>
      %197 = vector.shape_cast %196 : vector<1x1x64x8xbf16> to vector<64x8xbf16>
      %cst_151 = arith.constant dense<0.000000e+00> : vector<32x8xf32>
      %198 = tpu.matmul %2, %197, %cst_151 {dimension_numbers = #tpu.dot_dimension_numbers<[1], [0], [0], [1], [0, 0, 1, 1], [], []>} : vector<32x64xbf16>, vector<64x8xbf16>, vector<32x8xf32> -> vector<32x8xf32>
      %199 = arith.truncf %198 : vector<32x8xf32> to vector<32x8xbf16>
      %c2_152 = arith.constant 2 : index
      %c0_153 = arith.constant 0 : index
      %c0_154 = arith.constant 0 : index
      %200 = vector.load %arg14[%c2_152, %c0_153, %c0_154] : memref<4x32x8xbf16, #tpu.memory_space<vmem>>, vector<1x32x8xbf16>
      %201 = vector.shape_cast %200 : vector<1x32x8xbf16> to vector<32x8xbf16>
      %202 = vector.shape_cast %199 : vector<32x8xbf16> to vector<1x32x8xbf16>
      tpu.vector_store %arg14[%c2_152, %c0_153, %c0_154], %202 {strides = array<i32>} : memref<4x32x8xbf16, #tpu.memory_space<vmem>>, vector<1x32x8xbf16>,
      %c0_155 = arith.constant 0 : index
      %c3_156 = arith.constant 3 : index
      %c0_157 = arith.constant 0 : index
      %c0_158 = arith.constant 0 : index
      %203 = vector.load %arg8[%c0_155, %c3_156, %c0_157, %c0_158] : memref<1x4x64x8xbf16, #tpu.memory_space<vmem>>, vector<1x1x64x8xbf16>
      %204 = vector.shape_cast %203 : vector<1x1x64x8xbf16> to vector<64x8xbf16>
      %cst_159 = arith.constant dense<0.000000e+00> : vector<32x8xf32>
      %205 = tpu.matmul %2, %204, %cst_159 {dimension_numbers = #tpu.dot_dimension_numbers<[1], [0], [0], [1], [0, 0, 1, 1], [], []>} : vector<32x64xbf16>, vector<64x8xbf16>, vector<32x8xf32> -> vector<32x8xf32>
      %206 = arith.truncf %205 : vector<32x8xf32> to vector<32x8xbf16>
      %c3_160 = arith.constant 3 : index
      %c0_161 = arith.constant 0 : index
      %c0_162 = arith.constant 0 : index
      %207 = vector.load %arg13[%c3_160, %c0_161, %c0_162] : memref<4x32x8xbf16, #tpu.memory_space<vmem>>, vector<1x32x8xbf16>
      %208 = vector.shape_cast %207 : vector<1x32x8xbf16> to vector<32x8xbf16>
      %209 = vector.shape_cast %206 : vector<32x8xbf16> to vector<1x32x8xbf16>
      tpu.vector_store %arg13[%c3_160, %c0_161, %c0_162], %209 {strides = array<i32>} : memref<4x32x8xbf16, #tpu.memory_space<vmem>>, vector<1x32x8xbf16>,
      %c0_163 = arith.constant 0 : index
      %c3_164 = arith.constant 3 : index
      %c0_165 = arith.constant 0 : index
      %c0_166 = arith.constant 0 : index
      %210 = vector.load %arg9[%c0_163, %c3_164, %c0_165, %c0_166] : memref<1x4x64x8xbf16, #tpu.memory_space<vmem>>, vector<1x1x64x8xbf16>
      %211 = vector.shape_cast %210 : vector<1x1x64x8xbf16> to vector<64x8xbf16>
      %cst_167 = arith.constant dense<0.000000e+00> : vector<32x8xf32>
      %212 = tpu.matmul %2, %211, %cst_167 {dimension_numbers = #tpu.dot_dimension_numbers<[1], [0], [0], [1], [0, 0, 1, 1], [], []>} : vector<32x64xbf16>, vector<64x8xbf16>, vector<32x8xf32> -> vector<32x8xf32>
      %213 = arith.truncf %212 : vector<32x8xf32> to vector<32x8xbf16>
      %c3_168 = arith.constant 3 : index
      %c0_169 = arith.constant 0 : index
      %c0_170 = arith.constant 0 : index
      %214 = vector.load %arg14[%c3_168, %c0_169, %c0_170] : memref<4x32x8xbf16, #tpu.memory_space<vmem>>, vector<1x32x8xbf16>
      %215 = vector.shape_cast %214 : vector<1x32x8xbf16> to vector<32x8xbf16>
      %216 = vector.shape_cast %213 : vector<32x8xbf16> to vector<1x32x8xbf16>
      tpu.vector_store %arg14[%c3_168, %c0_169, %c0_170], %216 {strides = array<i32>} : memref<4x32x8xbf16, #tpu.memory_space<vmem>>, vector<1x32x8xbf16>,
    } else {
    }
    %cst = arith.constant 0.000000e+00 : f32
    %8 = vector.broadcast %cst : f32 to vector<16x64xf32>
    %c0_3 = arith.constant 0 : index
    %c0_4 = arith.constant 0 : index
    %c0_5 = arith.constant 0 : index
    %9 = vector.load %arg3[%c0_3, %c0_4, %c0_5] : memref<1x16x64xbf16, #tpu.memory_space<vmem>>, vector<1x16x64xbf16>
    %10 = vector.shape_cast %9 : vector<1x16x64xbf16> to vector<16x64xbf16>
    %c0_6 = arith.constant 0 : index
    %c0_7 = arith.constant 0 : index
    %c0_8 = arith.constant 0 : index
    %11 = vector.load %arg4[%c0_6, %c0_7, %c0_8] : memref<1x64x64xbf16, #tpu.memory_space<vmem>>, vector<1x64x64xbf16>
    %12 = vector.shape_cast %11 : vector<1x64x64xbf16> to vector<64x64xbf16>
    %c0_9 = arith.constant 0 : index
    %c0_10 = arith.constant 0 : index
    %c0_11 = arith.constant 0 : index
    %13 = vector.load %arg5[%c0_9, %c0_10, %c0_11] : memref<1x64x64xbf16, #tpu.memory_space<vmem>>, vector<1x64x64xbf16>
    %14 = vector.shape_cast %13 : vector<1x64x64xbf16> to vector<64x64xbf16>
    %cst_12 = arith.constant dense<0.000000e+00> : vector<16x64xf32>
    %15 = tpu.matmul %10, %12, %cst_12 {dimension_numbers = #tpu.dot_dimension_numbers<[1], [1], [0], [0], [0, 0, 1, 0], [], []>} : vector<16x64xbf16>, vector<64x64xbf16>, vector<16x64xf32> -> vector<16x64xf32>
    %cst_13 = arith.constant dense<0xFF800000> : vector<16xf32>
    %16 = vector.multi_reduction <maximumf>, %15, %cst_13 [1] : vector<16x64xf32> to vector<16xf32>
    %17 = vector.shape_cast %16 : vector<16xf32> to vector<16x1xf32>
    %18 = vector.broadcast %17 : vector<16x1xf32> to vector<16x64xf32>
    %19 = arith.subf %15, %18 : vector<16x64xf32>
    %20 = math.exp %19 : vector<16x64xf32>
    %cst_14 = arith.constant dense<0.000000e+00> : vector<16xf32>
    %21 = vector.multi_reduction <add>, %20, %cst_14 [1] : vector<16x64xf32> to vector<16xf32>
    %22 = vector.shape_cast %21 : vector<16xf32> to vector<16x1xf32>
    %23 = arith.truncf %20 : vector<16x64xf32> to vector<16x64xbf16>
    %cst_15 = arith.constant dense<0.000000e+00> : vector<16x64xf32>
    %24 = tpu.matmul %23, %14, %cst_15 {dimension_numbers = #tpu.dot_dimension_numbers<[1], [0], [0], [1], [0, 0, 1, 1], [], []>} : vector<16x64xbf16>, vector<64x64xbf16>, vector<16x64xf32> -> vector<16x64xf32>
    %25 = tpu.reciprocal %22 {approx = true} : vector<16x1xf32> -> vector<16x1xf32>
    %26 = vector.broadcast %25 : vector<16x1xf32> to vector<16x64xf32>
    %27 = arith.mulf %24, %26 : vector<16x64xf32>
    %28 = arith.truncf %27 : vector<16x64xf32> to vector<16x64xbf16>
    %c0_16 = arith.constant 0 : index
    %c0_17 = arith.constant 0 : index
    %c0_18 = arith.constant 0 : index
    %29 = vector.load %arg6[%c0_16, %c0_17, %c0_18] : memref<1x64x64xbf16, #tpu.memory_space<vmem>>, vector<1x64x64xbf16>
    %30 = vector.shape_cast %29 : vector<1x64x64xbf16> to vector<64x64xbf16>
    %cst_19 = arith.constant dense<0.000000e+00> : vector<16x64xf32>
    %31 = tpu.matmul %28, %30, %cst_19 {dimension_numbers = #tpu.dot_dimension_numbers<[1], [0], [0], [1], [0, 0, 1, 1], [], []>} : vector<16x64xbf16>, vector<64x64xbf16>, vector<16x64xf32> -> vector<16x64xf32>
    %32 = arith.addf %8, %31 : vector<16x64xf32>
    %cst_20 = arith.constant 1.000000e+00 : f32
    %33 = vector.broadcast %cst_20 : f32 to vector<16x1xf32>
    %34 = arith.divf %33, %22 : vector<16x1xf32>
    %35 = vector.broadcast %34 : vector<16x1xf32> to vector<16x64xf32>
    %36 = arith.mulf %20, %35 : vector<16x64xf32>
    %c0_21 = arith.constant 0 : index
    %c0_22 = arith.constant 0 : index
    %37 = vector.load %arg12[%c0_21, %c0_22] : memref<16x64xf32, #tpu.memory_space<vmem>>, vector<16x64xf32>
    tpu.vector_store %arg12[%c0_21, %c0_22], %36 {strides = array<i32>} : memref<16x64xf32, #tpu.memory_space<vmem>>, vector<16x64xf32>,
    %cst_23 = arith.constant 0.000000e+00 : f32
    %38 = vector.broadcast %cst_23 : f32 to vector<16x64xf32>
    %c0_24 = arith.constant 0 : index
    %c0_25 = arith.constant 0 : index
    %c0_26 = arith.constant 0 : index
    %c0_27 = arith.constant 0 : index
    %39 = vector.load %arg7[%c0_24, %c0_25, %c0_26, %c0_27] : memref<1x4x64x8xbf16, #tpu.memory_space<vmem>>, vector<1x1x64x8xbf16>
    %40 = vector.shape_cast %39 : vector<1x1x64x8xbf16> to vector<64x8xbf16>
    %cst_28 = arith.constant dense<0.000000e+00> : vector<16x8xf32>
    %41 = tpu.matmul %4, %40, %cst_28 {dimension_numbers = #tpu.dot_dimension_numbers<[1], [0], [0], [1], [0, 0, 1, 1], [], []>} : vector<16x64xbf16>, vector<64x8xbf16>, vector<16x8xf32> -> vector<16x8xf32>
    %42 = arith.truncf %41 : vector<16x8xf32> to vector<16x8xbf16>
    %c0_29 = arith.constant 0 : index
    %c0_30 = arith.constant 0 : index
    %c0_31 = arith.constant 0 : index
    %43 = vector.load %arg13[%c0_29, %c0_30, %c0_31] : memref<4x32x8xbf16, #tpu.memory_space<vmem>>, vector<1x32x8xbf16>
    %44 = vector.shape_cast %43 : vector<1x32x8xbf16> to vector<32x8xbf16>
    %c0_32 = arith.constant 0 : index
    %c0_33 = arith.constant 0 : index
    %c0_34 = arith.constant 0 : index
    %45 = vector.load %arg14[%c0_32, %c0_33, %c0_34] : memref<4x32x8xbf16, #tpu.memory_space<vmem>>, vector<1x32x8xbf16>
    %46 = vector.shape_cast %45 : vector<1x32x8xbf16> to vector<32x8xbf16>
    %cst_35 = arith.constant dense<0.000000e+00> : vector<16x32xf32>
    %47 = tpu.matmul %42, %44, %cst_35 {dimension_numbers = #tpu.dot_dimension_numbers<[1], [1], [0], [0], [0, 0, 1, 0], [], []>} : vector<16x8xbf16>, vector<32x8xbf16>, vector<16x32xf32> -> vector<16x32xf32>
    %cst_36 = arith.constant dense<0xFF800000> : vector<16xf32>
    %48 = vector.multi_reduction <maximumf>, %47, %cst_36 [1] : vector<16x32xf32> to vector<16xf32>
    %49 = vector.shape_cast %48 : vector<16xf32> to vector<16x1xf32>
    %50 = vector.broadcast %49 : vector<16x1xf32> to vector<16x32xf32>
    %51 = arith.subf %47, %50 : vector<16x32xf32>
    %52 = math.exp %51 : vector<16x32xf32>
    %cst_37 = arith.constant dense<0.000000e+00> : vector<16xf32>
    %53 = vector.multi_reduction <add>, %52, %cst_37 [1] : vector<16x32xf32> to vector<16xf32>
    %54 = vector.shape_cast %53 : vector<16xf32> to vector<16x1xf32>
    %55 = arith.truncf %52 : vector<16x32xf32> to vector<16x32xbf16>
    %cst_38 = arith.constant dense<0.000000e+00> : vector<16x8xf32>
    %56 = tpu.matmul %55, %46, %cst_38 {dimension_numbers = #tpu.dot_dimension_numbers<[1], [0], [0], [1], [0, 0, 1, 1], [], []>} : vector<16x32xbf16>, vector<32x8xbf16>, vector<16x8xf32> -> vector<16x8xf32>
    %57 = tpu.reciprocal %54 {approx = true} : vector<16x1xf32> -> vector<16x1xf32>
    %58 = vector.broadcast %57 : vector<16x1xf32> to vector<16x8xf32>
    %59 = arith.mulf %56, %58 : vector<16x8xf32>
    %60 = arith.truncf %59 : vector<16x8xf32> to vector<16x8xbf16>
    %c0_39 = arith.constant 0 : index
    %c0_40 = arith.constant 0 : index
    %c0_41 = arith.constant 0 : index
    %c0_42 = arith.constant 0 : index
    %61 = vector.load %arg10[%c0_39, %c0_40, %c0_41, %c0_42] : memref<1x4x8x64xbf16, #tpu.memory_space<vmem>>, vector<1x1x8x64xbf16>
    %62 = vector.shape_cast %61 : vector<1x1x8x64xbf16> to vector<8x64xbf16>
    %cst_43 = arith.constant dense<0.000000e+00> : vector<16x64xf32>
    %63 = tpu.matmul %60, %62, %cst_43 {dimension_numbers = #tpu.dot_dimension_numbers<[1], [0], [0], [1], [0, 0, 1, 1], [], []>} : vector<16x8xbf16>, vector<8x64xbf16>, vector<16x64xf32> -> vector<16x64xf32>
    %64 = arith.addf %38, %63 : vector<16x64xf32>
    %c0_44 = arith.constant 0 : index
    %c1 = arith.constant 1 : index
    %c0_45 = arith.constant 0 : index
    %c0_46 = arith.constant 0 : index
    %65 = vector.load %arg7[%c0_44, %c1, %c0_45, %c0_46] : memref<1x4x64x8xbf16, #tpu.memory_space<vmem>>, vector<1x1x64x8xbf16>
    %66 = vector.shape_cast %65 : vector<1x1x64x8xbf16> to vector<64x8xbf16>
    %cst_47 = arith.constant dense<0.000000e+00> : vector<16x8xf32>
    %67 = tpu.matmul %4, %66, %cst_47 {dimension_numbers = #tpu.dot_dimension_numbers<[1], [0], [0], [1], [0, 0, 1, 1], [], []>} : vector<16x64xbf16>, vector<64x8xbf16>, vector<16x8xf32> -> vector<16x8xf32>
    %68 = arith.truncf %67 : vector<16x8xf32> to vector<16x8xbf16>
    %c1_48 = arith.constant 1 : index
    %c0_49 = arith.constant 0 : index
    %c0_50 = arith.constant 0 : index
    %69 = vector.load %arg13[%c1_48, %c0_49, %c0_50] : memref<4x32x8xbf16, #tpu.memory_space<vmem>>, vector<1x32x8xbf16>
    %70 = vector.shape_cast %69 : vector<1x32x8xbf16> to vector<32x8xbf16>
    %c1_51 = arith.constant 1 : index
    %c0_52 = arith.constant 0 : index
    %c0_53 = arith.constant 0 : index
    %71 = vector.load %arg14[%c1_51, %c0_52, %c0_53] : memref<4x32x8xbf16, #tpu.memory_space<vmem>>, vector<1x32x8xbf16>
    %72 = vector.shape_cast %71 : vector<1x32x8xbf16> to vector<32x8xbf16>
    %cst_54 = arith.constant dense<0.000000e+00> : vector<16x32xf32>
    %73 = tpu.matmul %68, %70, %cst_54 {dimension_numbers = #tpu.dot_dimension_numbers<[1], [1], [0], [0], [0, 0, 1, 0], [], []>} : vector<16x8xbf16>, vector<32x8xbf16>, vector<16x32xf32> -> vector<16x32xf32>
    %cst_55 = arith.constant dense<0xFF800000> : vector<16xf32>
    %74 = vector.multi_reduction <maximumf>, %73, %cst_55 [1] : vector<16x32xf32> to vector<16xf32>
    %75 = vector.shape_cast %74 : vector<16xf32> to vector<16x1xf32>
    %76 = vector.broadcast %75 : vector<16x1xf32> to vector<16x32xf32>
    %77 = arith.subf %73, %76 : vector<16x32xf32>
    %78 = math.exp %77 : vector<16x32xf32>
    %cst_56 = arith.constant dense<0.000000e+00> : vector<16xf32>
    %79 = vector.multi_reduction <add>, %78, %cst_56 [1] : vector<16x32xf32> to vector<16xf32>
    %80 = vector.shape_cast %79 : vector<16xf32> to vector<16x1xf32>
    %81 = arith.truncf %78 : vector<16x32xf32> to vector<16x32xbf16>
    %cst_57 = arith.constant dense<0.000000e+00> : vector<16x8xf32>
    %82 = tpu.matmul %81, %72, %cst_57 {dimension_numbers = #tpu.dot_dimension_numbers<[1], [0], [0], [1], [0, 0, 1, 1], [], []>} : vector<16x32xbf16>, vector<32x8xbf16>, vector<16x8xf32> -> vector<16x8xf32>
    %83 = tpu.reciprocal %80 {approx = true} : vector<16x1xf32> -> vector<16x1xf32>
    %84 = vector.broadcast %83 : vector<16x1xf32> to vector<16x8xf32>
    %85 = arith.mulf %82, %84 : vector<16x8xf32>
    %86 = arith.truncf %85 : vector<16x8xf32> to vector<16x8xbf16>
    %c0_58 = arith.constant 0 : index
    %c1_59 = arith.constant 1 : index
    %c0_60 = arith.constant 0 : index
    %c0_61 = arith.constant 0 : index
    %87 = vector.load %arg10[%c0_58, %c1_59, %c0_60, %c0_61] : memref<1x4x8x64xbf16, #tpu.memory_space<vmem>>, vector<1x1x8x64xbf16>
    %88 = vector.shape_cast %87 : vector<1x1x8x64xbf16> to vector<8x64xbf16>
    %cst_62 = arith.constant dense<0.000000e+00> : vector<16x64xf32>
    %89 = tpu.matmul %86, %88, %cst_62 {dimension_numbers = #tpu.dot_dimension_numbers<[1], [0], [0], [1], [0, 0, 1, 1], [], []>} : vector<16x8xbf16>, vector<8x64xbf16>, vector<16x64xf32> -> vector<16x64xf32>
    %90 = arith.addf %64, %89 : vector<16x64xf32>
    %c0_63 = arith.constant 0 : index
    %c2 = arith.constant 2 : index
    %c0_64 = arith.constant 0 : index
    %c0_65 = arith.constant 0 : index
    %91 = vector.load %arg7[%c0_63, %c2, %c0_64, %c0_65] : memref<1x4x64x8xbf16, #tpu.memory_space<vmem>>, vector<1x1x64x8xbf16>
    %92 = vector.shape_cast %91 : vector<1x1x64x8xbf16> to vector<64x8xbf16>
    %cst_66 = arith.constant dense<0.000000e+00> : vector<16x8xf32>
    %93 = tpu.matmul %4, %92, %cst_66 {dimension_numbers = #tpu.dot_dimension_numbers<[1], [0], [0], [1], [0, 0, 1, 1], [], []>} : vector<16x64xbf16>, vector<64x8xbf16>, vector<16x8xf32> -> vector<16x8xf32>
    %94 = arith.truncf %93 : vector<16x8xf32> to vector<16x8xbf16>
    %c2_67 = arith.constant 2 : index
    %c0_68 = arith.constant 0 : index
    %c0_69 = arith.constant 0 : index
    %95 = vector.load %arg13[%c2_67, %c0_68, %c0_69] : memref<4x32x8xbf16, #tpu.memory_space<vmem>>, vector<1x32x8xbf16>
    %96 = vector.shape_cast %95 : vector<1x32x8xbf16> to vector<32x8xbf16>
    %c2_70 = arith.constant 2 : index
    %c0_71 = arith.constant 0 : index
    %c0_72 = arith.constant 0 : index
    %97 = vector.load %arg14[%c2_70, %c0_71, %c0_72] : memref<4x32x8xbf16, #tpu.memory_space<vmem>>, vector<1x32x8xbf16>
    %98 = vector.shape_cast %97 : vector<1x32x8xbf16> to vector<32x8xbf16>
    %cst_73 = arith.constant dense<0.000000e+00> : vector<16x32xf32>
    %99 = tpu.matmul %94, %96, %cst_73 {dimension_numbers = #tpu.dot_dimension_numbers<[1], [1], [0], [0], [0, 0, 1, 0], [], []>} : vector<16x8xbf16>, vector<32x8xbf16>, vector<16x32xf32> -> vector<16x32xf32>
    %cst_74 = arith.constant dense<0xFF800000> : vector<16xf32>
    %100 = vector.multi_reduction <maximumf>, %99, %cst_74 [1] : vector<16x32xf32> to vector<16xf32>
    %101 = vector.shape_cast %100 : vector<16xf32> to vector<16x1xf32>
    %102 = vector.broadcast %101 : vector<16x1xf32> to vector<16x32xf32>
    %103 = arith.subf %99, %102 : vector<16x32xf32>
    %104 = math.exp %103 : vector<16x32xf32>
    %cst_75 = arith.constant dense<0.000000e+00> : vector<16xf32>
    %105 = vector.multi_reduction <add>, %104, %cst_75 [1] : vector<16x32xf32> to vector<16xf32>
    %106 = vector.shape_cast %105 : vector<16xf32> to vector<16x1xf32>
    %107 = arith.truncf %104 : vector<16x32xf32> to vector<16x32xbf16>
    %cst_76 = arith.constant dense<0.000000e+00> : vector<16x8xf32>
    %108 = tpu.matmul %107, %98, %cst_76 {dimension_numbers = #tpu.dot_dimension_numbers<[1], [0], [0], [1], [0, 0, 1, 1], [], []>} : vector<16x32xbf16>, vector<32x8xbf16>, vector<16x8xf32> -> vector<16x8xf32>
    %109 = tpu.reciprocal %106 {approx = true} : vector<16x1xf32> -> vector<16x1xf32>
    %110 = vector.broadcast %109 : vector<16x1xf32> to vector<16x8xf32>
    %111 = arith.mulf %108, %110 : vector<16x8xf32>
    %112 = arith.truncf %111 : vector<16x8xf32> to vector<16x8xbf16>
    %c0_77 = arith.constant 0 : index
    %c2_78 = arith.constant 2 : index
    %c0_79 = arith.constant 0 : index
    %c0_80 = arith.constant 0 : index
    %113 = vector.load %arg10[%c0_77, %c2_78, %c0_79, %c0_80] : memref<1x4x8x64xbf16, #tpu.memory_space<vmem>>, vector<1x1x8x64xbf16>
    %114 = vector.shape_cast %113 : vector<1x1x8x64xbf16> to vector<8x64xbf16>
    %cst_81 = arith.constant dense<0.000000e+00> : vector<16x64xf32>
    %115 = tpu.matmul %112, %114, %cst_81 {dimension_numbers = #tpu.dot_dimension_numbers<[1], [0], [0], [1], [0, 0, 1, 1], [], []>} : vector<16x8xbf16>, vector<8x64xbf16>, vector<16x64xf32> -> vector<16x64xf32>
    %116 = arith.addf %90, %115 : vector<16x64xf32>
    %c0_82 = arith.constant 0 : index
    %c3 = arith.constant 3 : index
    %c0_83 = arith.constant 0 : index
    %c0_84 = arith.constant 0 : index
    %117 = vector.load %arg7[%c0_82, %c3, %c0_83, %c0_84] : memref<1x4x64x8xbf16, #tpu.memory_space<vmem>>, vector<1x1x64x8xbf16>
    %118 = vector.shape_cast %117 : vector<1x1x64x8xbf16> to vector<64x8xbf16>
    %cst_85 = arith.constant dense<0.000000e+00> : vector<16x8xf32>
    %119 = tpu.matmul %4, %118, %cst_85 {dimension_numbers = #tpu.dot_dimension_numbers<[1], [0], [0], [1], [0, 0, 1, 1], [], []>} : vector<16x64xbf16>, vector<64x8xbf16>, vector<16x8xf32> -> vector<16x8xf32>
    %120 = arith.truncf %119 : vector<16x8xf32> to vector<16x8xbf16>
    %c3_86 = arith.constant 3 : index
    %c0_87 = arith.constant 0 : index
    %c0_88 = arith.constant 0 : index
    %121 = vector.load %arg13[%c3_86, %c0_87, %c0_88] : memref<4x32x8xbf16, #tpu.memory_space<vmem>>, vector<1x32x8xbf16>
    %122 = vector.shape_cast %121 : vector<1x32x8xbf16> to vector<32x8xbf16>
    %c3_89 = arith.constant 3 : index
    %c0_90 = arith.constant 0 : index
    %c0_91 = arith.constant 0 : index
    %123 = vector.load %arg14[%c3_89, %c0_90, %c0_91] : memref<4x32x8xbf16, #tpu.memory_space<vmem>>, vector<1x32x8xbf16>
    %124 = vector.shape_cast %123 : vector<1x32x8xbf16> to vector<32x8xbf16>
    %cst_92 = arith.constant dense<0.000000e+00> : vector<16x32xf32>
    %125 = tpu.matmul %120, %122, %cst_92 {dimension_numbers = #tpu.dot_dimension_numbers<[1], [1], [0], [0], [0, 0, 1, 0], [], []>} : vector<16x8xbf16>, vector<32x8xbf16>, vector<16x32xf32> -> vector<16x32xf32>
    %cst_93 = arith.constant dense<0xFF800000> : vector<16xf32>
    %126 = vector.multi_reduction <maximumf>, %125, %cst_93 [1] : vector<16x32xf32> to vector<16xf32>
    %127 = vector.shape_cast %126 : vector<16xf32> to vector<16x1xf32>
    %128 = vector.broadcast %127 : vector<16x1xf32> to vector<16x32xf32>
    %129 = arith.subf %125, %128 : vector<16x32xf32>
    %130 = math.exp %129 : vector<16x32xf32>
    %cst_94 = arith.constant dense<0.000000e+00> : vector<16xf32>
    %131 = vector.multi_reduction <add>, %130, %cst_94 [1] : vector<16x32xf32> to vector<16xf32>
    %132 = vector.shape_cast %131 : vector<16xf32> to vector<16x1xf32>
    %133 = arith.truncf %130 : vector<16x32xf32> to vector<16x32xbf16>
    %cst_95 = arith.constant dense<0.000000e+00> : vector<16x8xf32>
    %134 = tpu.matmul %133, %124, %cst_95 {dimension_numbers = #tpu.dot_dimension_numbers<[1], [0], [0], [1], [0, 0, 1, 1], [], []>} : vector<16x32xbf16>, vector<32x8xbf16>, vector<16x8xf32> -> vector<16x8xf32>
    %135 = tpu.reciprocal %132 {approx = true} : vector<16x1xf32> -> vector<16x1xf32>
    %136 = vector.broadcast %135 : vector<16x1xf32> to vector<16x8xf32>
    %137 = arith.mulf %134, %136 : vector<16x8xf32>
    %138 = arith.truncf %137 : vector<16x8xf32> to vector<16x8xbf16>
    %c0_96 = arith.constant 0 : index
    %c3_97 = arith.constant 3 : index
    %c0_98 = arith.constant 0 : index
    %c0_99 = arith.constant 0 : index
    %139 = vector.load %arg10[%c0_96, %c3_97, %c0_98, %c0_99] : memref<1x4x8x64xbf16, #tpu.memory_space<vmem>>, vector<1x1x8x64xbf16>
    %140 = vector.shape_cast %139 : vector<1x1x8x64xbf16> to vector<8x64xbf16>
    %cst_100 = arith.constant dense<0.000000e+00> : vector<16x64xf32>
    %141 = tpu.matmul %138, %140, %cst_100 {dimension_numbers = #tpu.dot_dimension_numbers<[1], [0], [0], [1], [0, 0, 1, 1], [], []>} : vector<16x8xbf16>, vector<8x64xbf16>, vector<16x64xf32> -> vector<16x64xf32>
    %142 = arith.addf %116, %141 : vector<16x64xf32>
    %143 = arith.mulf %32, %32 : vector<16x64xf32>
    %cst_101 = arith.constant dense<0.000000e+00> : vector<16xf32>
    %144 = vector.multi_reduction <add>, %143, %cst_101 [1] : vector<16x64xf32> to vector<16xf32>
    %145 = vector.shape_cast %144 : vector<16xf32> to vector<16x1xf32>
    %cst_102 = arith.constant 1.000000e-24 : f32
    %146 = vector.broadcast %cst_102 : f32 to vector<16x1xf32>
    %147 = arith.maximumf %145, %146 : vector<16x1xf32>
    %148 = math.rsqrt %147 : vector<16x1xf32>
    %149 = vector.broadcast %148 : vector<16x1xf32> to vector<16x64xf32>
    %150 = arith.mulf %32, %149 : vector<16x64xf32>
    %151 = arith.mulf %142, %142 : vector<16x64xf32>
    %cst_103 = arith.constant dense<0.000000e+00> : vector<16xf32>
    %152 = vector.multi_reduction <add>, %151, %cst_103 [1] : vector<16x64xf32> to vector<16xf32>
    %153 = vector.shape_cast %152 : vector<16xf32> to vector<16x1xf32>
    %cst_104 = arith.constant 1.000000e-24 : f32
    %154 = vector.broadcast %cst_104 : f32 to vector<16x1xf32>
    %155 = arith.maximumf %153, %154 : vector<16x1xf32>
    %156 = math.rsqrt %155 : vector<16x1xf32>
    %157 = vector.broadcast %156 : vector<16x1xf32> to vector<16x64xf32>
    %158 = arith.mulf %142, %157 : vector<16x64xf32>
    %159 = arith.addf %150, %158 : vector<16x64xf32>
    %c0_105 = arith.constant 0 : index
    %c0_106 = arith.constant 0 : index
    %160 = vector.load %arg11[%c0_105, %c0_106] : memref<16x64xf32, #tpu.memory_space<vmem>>, vector<16x64xf32>
    tpu.vector_store %arg11[%c0_105, %c0_106], %159 {strides = array<i32>} : memref<16x64xf32, #tpu.memory_space<vmem>>, vector<16x64xf32>,
    return
  }
  func.func @transform_0(%arg0: i32, %arg1: i32) -> (i32, i32) {
    %c0_i32 = arith.constant 0 : i32
    %c0_i32_0 = arith.constant 0 : i32
    return %arg0, %c0_i32 : i32, i32
  }
  func.func @transform_1(%arg0: i32, %arg1: i32) -> (i32, i32, i32) {
    %c2_i32 = arith.constant 2 : i32
    %0 = arith.muli %arg0, %c2_i32 : i32
    %1 = arith.addi %0, %arg1 : i32
    %c0_i32 = arith.constant 0 : i32
    %c0_i32_0 = arith.constant 0 : i32
    %c0_i32_1 = arith.constant 0 : i32
    return %c0_i32, %1, %c0_i32_0 : i32, i32, i32
  }
  func.func @transform_2(%arg0: i32, %arg1: i32) -> (i32, i32, i32) {
    %c0_i32 = arith.constant 0 : i32
    %c0_i32_0 = arith.constant 0 : i32
    %c0_i32_1 = arith.constant 0 : i32
    %c0_i32_2 = arith.constant 0 : i32
    return %c0_i32, %c0_i32_0, %c0_i32_1 : i32, i32, i32
  }
  func.func @transform_3(%arg0: i32, %arg1: i32) -> (i32, i32, i32) {
    %c0_i32 = arith.constant 0 : i32
    %c0_i32_0 = arith.constant 0 : i32
    %c0_i32_1 = arith.constant 0 : i32
    %c0_i32_2 = arith.constant 0 : i32
    return %c0_i32, %c0_i32_0, %c0_i32_1 : i32, i32, i32
  }
  func.func @transform_4(%arg0: i32, %arg1: i32) -> (i32, i32, i32) {
    %c0_i32 = arith.constant 0 : i32
    %c0_i32_0 = arith.constant 0 : i32
    %c0_i32_1 = arith.constant 0 : i32
    %c0_i32_2 = arith.constant 0 : i32
    return %c0_i32, %c0_i32_0, %c0_i32_1 : i32, i32, i32
  }
  func.func @transform_5(%arg0: i32, %arg1: i32) -> (i32, i32, i32, i32) {
    %c0_i32 = arith.constant 0 : i32
    %c0_i32_0 = arith.constant 0 : i32
    %c0_i32_1 = arith.constant 0 : i32
    %c0_i32_2 = arith.constant 0 : i32
    return %arg0, %c0_i32, %c0_i32_0, %c0_i32_1 : i32, i32, i32, i32
  }
  func.func @transform_6(%arg0: i32, %arg1: i32) -> (i32, i32, i32, i32) {
    %c0_i32 = arith.constant 0 : i32
    %c0_i32_0 = arith.constant 0 : i32
    %c0_i32_1 = arith.constant 0 : i32
    %c0_i32_2 = arith.constant 0 : i32
    return %arg0, %c0_i32, %c0_i32_0, %c0_i32_1 : i32, i32, i32, i32
  }
  func.func @transform_7(%arg0: i32, %arg1: i32) -> (i32, i32, i32, i32) {
    %c0_i32 = arith.constant 0 : i32
    %c0_i32_0 = arith.constant 0 : i32
    %c0_i32_1 = arith.constant 0 : i32
    %c0_i32_2 = arith.constant 0 : i32
    return %arg0, %c0_i32, %c0_i32_0, %c0_i32_1 : i32, i32, i32, i32
  }
  func.func @transform_8(%arg0: i32, %arg1: i32) -> (i32, i32, i32, i32) {
    %c0_i32 = arith.constant 0 : i32
    %c0_i32_0 = arith.constant 0 : i32
    %c0_i32_1 = arith.constant 0 : i32
    %c0_i32_2 = arith.constant 0 : i32
    return %arg0, %c0_i32, %c0_i32_0, %c0_i32_1 : i32, i32, i32, i32
  }
  func.func @transform_9(%arg0: i32, %arg1: i32) -> (i32, i32) {
    %c2_i32 = arith.constant 2 : i32
    %0 = arith.muli %arg0, %c2_i32 : i32
    %1 = arith.addi %0, %arg1 : i32
    %c0_i32 = arith.constant 0 : i32
    %c0_i32_0 = arith.constant 0 : i32
    return %1, %c0_i32 : i32, i32
  }
  func.func @transform_10(%arg0: i32, %arg1: i32) -> (i32, i32) {
    %c2_i32 = arith.constant 2 : i32
    %0 = arith.muli %arg0, %c2_i32 : i32
    %1 = arith.addi %0, %arg1 : i32
    %c0_i32 = arith.constant 0 : i32
    %c0_i32_0 = arith.constant 0 : i32
    return %1, %c0_i32 : i32, i32
  }
}

</mosaic_0001>

<bundles_post_ra>
// kernel: multi_attention.2
= control target key start
LH: loop header
LB: loop body
LE: loop exit
PB: predicated region body
PF: predicated region fallthrough
CT: control target
= control target key end

     0   :  { %13 = vsyncpa [#allocation3], 0  ;;  %s1528_s0 = inlined_call_operand.hbm [shape: f32[64,64], index: 0, kind: input, shape index: {}]   ;;  %s1529_s1 = inlined_call_operand.hbm [shape: bf16[1,64,64], index: 1, kind: input, shape index: {}]   ;;  %s1530_s2 = inlined_call_operand.hbm [shape: bf16[1,64,64], index: 2, kind: input, shape index: {}]   ;;  %s1531_s3 = inlined_call_operand.hbm [shape: bf16[1,64,64], index: 3, kind: input, shape index: {}]   ;;  %s1532_s4 = inlined_call_operand.vmem [shape: bf16[1,64,64], index: 4, kind: output, shape index: {0}]   ;;  %s1533_s5 = inlined_call_operand.vmem [shape: bf16[1,64,64], index: 5, kind: output, shape index: {1}]   ;;  %s1534_s6 = inlined_call_operand.vmem [shape: bf16[1,64,64], index: 6, kind: output, shape index: {2}]   ;;  %s1535_s7 = inlined_call_operand.vmem [shape: bf16[64,64], index: 7, kind: output, shape index: {3}]  }
   0x1   :  { %15 = vsyncpa [#allocation3 + $0x1], 0 }
   0x2   :  { %16 = vsyncpa [#allocation5], 0 }
   0x3   :  { %17 = vsyncpa [#allocation8], 0  ;;  %s1333_s24 = smov 0   ;;  %s1335_s25 = smov 0  }
   0x4   :  { %s1337_s26 = smov 0   ;;  %s1339_s27 = smov 0  }
   0x5 LB: > { %s919_s28 = sadd.s32 4294967295, %s1283_s27   ;;  %p43_p0 = scmp.ne.s32.totalorder %s1275_s25, %s1271_s24  ;;  %s1283_s27 = sphi %s1339_s27, %s1551_s27   ;;  %s1279_s26 = sphi %s1337_s26, %s1550_s26   ;;  %s1275_s25 = sphi %s1335_s25, %s1549_s25   ;;  %s1271_s24 = sphi %s1333_s24, %s1548_s24  }
   0x6   : > { %p1355_p1 = scmp.eq.s32.totalorder %s919_s28, 0  ;;  %p921_p2 = scmp.ge.s32.totalorder %s1283_s27, 1 }
   0x7   : > { %p221_p3 = scmp.lt.s32.totalorder %s1283_s27, 3  ;;  %s1285_s9 = smov [#allocation4]  }
   0x8   : > { %s1540_s29 = scalar_select %p1355_p1, 1, 0 }
   0x9   : > { %p1363_p4 = por %p1355_p1, %p43_p0  ;;  %p1367_p5 = pnand %p921_p2, %p221_p3 }
   0xa   : > { %s233_s10 = sshll.u32 %s1285_s9, 4  ;;  %s1286_s12 = smov [#allocation6]   ;;  %s234_s10 = int_to_ptr.vmem [resolvable:$true] %s233_s10 }
   0xb   : > { %s1541_s30 = scalar_select %p1363_p4, 1, 0 }
   0xc   : > { %s1542_s8 = scalar_select %p1367_p5, 1, 0 }
   0xd   : > { %p1063_p6 = pneg %p1367_p5  ;;  %s246_s13 = sshll.u32 %s1286_s12, 4  ;;  %s247_s13 = int_to_ptr.vmem [resolvable:$true] %s246_s13 }
   0xe   : > { %s1287_s14 = smov [#allocation7]   ;;  %s1146_s16 = scalar_lea.vmem %s234_s10, 512 }
   0xf   : > { %p1375_p7 = pnand %p1063_p6, %p1355_p1  ;;  %s259_s15 = sshll.u32 %s1287_s14, 4  ;;  %s260_s15 = int_to_ptr.vmem [resolvable:$true] %s259_s15 }
  0x10   : > { %p1147_p9 = scmp.ne.s32.totalorder %s234_s10, %s1146_s16  ;;  %p1154_p12 = scmp.lt.s32.totalorder %s234_s10, %s234_s10 }
  0x11   : > { %p1137_p8 = pneg %p1375_p7  ;;  %p1155_p13 = scmp.lt.s32.totalorder %s1146_s16, %s1146_s16 }
  0x13   : > { %p1149_p10 = pnand %p1147_p9, %p1137_p8  ;;  %p1156_p0 = por %p1155_p13, %p1154_p12 }
  0x15   : > { %p1150_p11 = pneg %p1149_p10 }
  0x17   : > { %p1157_p2 = pnand %p1156_p0, %p1150_p11 }
  0x19   : > { %1160 = shalt.err (!%p1157_p2)
}
  0x1a   : > { %s1288_s17 = smov 64   ;;  %s1289_s18 = smov 4  }
  0x1b   : > { %1066 = dma.hbm_to_vmem [thread:$0]  (!%p1375_p7), %s1529_s1, 512, %s234_s10, [#allocation5], %s1288_s17, %s1288_s17, %s1289_s18  }
  0x1c   : > { %s1172_s21 = scalar_lea.vmem %s247_s13, 512  ;;  %p1180_p10 = scmp.lt.s32.totalorder %s247_s13, %s247_s13 }
  0x1d   : > { %p1173_p3 = scmp.ne.s32.totalorder %s247_s13, %s1172_s21  ;;  %p1181_p1 = scmp.lt.s32.totalorder %s1172_s21, %s1172_s21 }
  0x1f   : > { %p1175_p6 = pnand %p1173_p3, %p1137_p8  ;;  %p1182_p12 = por %p1181_p1, %p1180_p10 }
  0x21   : > { %p1176_p9 = pneg %p1175_p6 }
  0x23   : > { %p1183_p11 = pnand %p1182_p12, %p1176_p9 }
  0x25   : > { %1186 = shalt.err (!%p1183_p11)
}
  0x26   : > { %1069 = dma.hbm_to_vmem [thread:$0]  (!%p1375_p7), %s1530_s2, 512, %s247_s13, [#allocation5], %s1288_s17, %s1288_s17, %s1289_s18  }
  0x27   : > { %s1198_s24 = scalar_lea.vmem %s260_s15, 512  ;;  %p1206_p3 = scmp.lt.s32.totalorder %s260_s15, %s260_s15 }
  0x28   : > { %p1199_p13 = scmp.ne.s32.totalorder %s260_s15, %s1198_s24  ;;  %p1207_p6 = scmp.lt.s32.totalorder %s1198_s24, %s1198_s24 }
  0x2a   : > { %p1201_p0 = pnand %p1199_p13, %p1137_p8  ;;  %p1208_p4 = por %p1207_p6, %p1206_p3 }
  0x2c   : > { %p1202_p2 = pneg %p1201_p0 }
  0x2e   : > { %p1209_p1 = pnand %p1208_p4, %p1202_p2 }
  0x30   : > { %1212 = shalt.err (!%p1209_p1)
}
  0x31   : > { %1072 = dma.hbm_to_vmem [thread:$0]  (!%p1375_p7), %s1531_s3, 512, %s260_s15, [#allocation8], %s1288_s17, %s1288_s17, %s1289_s18  }
  0x32   : > { %s1406_s12 = sadd.s32 1, %s1283_s27   ;;  %s30_s14 = sadd.s32 1, %s1279_s26 }
  0x33   : > { %s27_s13 = ssub.s32 %s1283_s27, %s1406_s12  ;;  %p37_p8 = scmp.ne.s32.totalorder %s1279_s26, %s1275_s25 }
  0x34   : > { %p28_p4 = scmp.eq.s32.totalorder %s27_s13, 0  ;;  %p38_p9 = scmp.eq.s32.totalorder %s1283_s27, 0 }
  0x35   : > { %p1080_p10 = scmp.lt.s32.totalorder %s1283_s27, 2  ;;  %s273_s16 = sand.u32 1, %s1279_s26  }
  0x36   : > { %s1416_s11 = scalar_select %p28_p4, %s1279_s26, %s30_s14  }
  0x37   : > { %p39_p12 = por %p38_p9, %p37_p8  ;;  %s926_s19 = sshll.u32 %s273_s16, 5 }
  0x38   : > { %s978_s20 = sshll.u32 %s1283_s27, 9  ;;  %s277_s15 = scalar_lea.vmem [#allocation2], %s926_s19 }
  0x39   : > { %s1423_s23 = scalar_lea.hbm %s1528_s0, %s978_s20  ;;  %s284_s17 = sshll.u32 %s277_s15, 4  ;;  %s1425_s17 = int_to_ptr.vmem [resolvable:$true] %s284_s17 }
  0x3a   : > { %p1427_p7 = pnand %p1080_p10, %p39_p12  ;;  %s1431_s24 = scalar_lea.sflag [#allocation3], %s273_s16 }
  0x3b   : > { %s1213_s9 = scalar_lea.hbm %s1423_s23, 512  ;;  %s1218_s14 = scalar_lea.hbm %s1528_s0, 1024 }
  0x3c   : > { %p1214_p11 = scmp.ne.s32.totalorder %s1423_s23, %s1213_s9  ;;  %p1215_p13 = pneg %p1427_p7 }
  0x3d   : > { %p1219_p3 = scmp.lt.s32.totalorder %s1423_s23, %s1528_s0  ;;  %p1220_p6 = scmp.lt.s32.totalorder %s1218_s14, %s1213_s9 }
  0x3e   : > { %p1216_p0 = pnand %p1215_p13, %p1214_p11 }
  0x3f   : > { %p1221_p1 = por %p1220_p6, %p1219_p3 }
  0x40   : > { %p1217_p2 = pneg %p1216_p0 }
  0x42   : > { %p1222_p4 = pnand %p1221_p1, %p1217_p2 }
  0x44   : > { %1225 = shalt.err (!%p1222_p4)
}
  0x45   : > { %s1226_s16 = scalar_lea.vmem %s1425_s17, 512  ;;  %s1290_s21 = smov [#allocation2]  }
  0x46   : > { %p1227_p8 = scmp.ne.s32.totalorder %s1425_s17, %s1226_s16  ;;  %s1231_s22 = sshll.u32 %s1290_s21, 4  ;;  %s1232_s22 = int_to_ptr.vmem [resolvable:$false] %s1231_s22 }
  0x47   : > { %s1233_s15 = scalar_lea.vmem %s1232_s22, 1024  ;;  %p1234_p12 = scmp.lt.s32.totalorder %s1425_s17, %s1232_s22 }
  0x48   : > { %p1229_p9 = pnand %p1227_p8, %p1215_p13  ;;  %p1235_p11 = scmp.lt.s32.totalorder %s1233_s15, %s1226_s16 }
  0x4a   : > { %p1230_p10 = pneg %p1229_p9  ;;  %p1236_p0 = por %p1235_p11, %p1234_p12 }
  0x4c   : > { %p1237_p5 = pnand %p1236_p0, %p1230_p10 }
  0x4e   : > { %1240 = shalt.err (!%p1237_p5)
}
  0x4f   : > { %s1291_s9 = smov 128   ;;  %s1292_s10 = smov 8  }
  0x50   : > { %1076 = dma.hbm_to_vmem [thread:$0]  (!%p1427_p7), %s1423_s23, 512, %s1425_s17, %s1431_s24, %s1291_s9, %s1291_s9, %s1292_s10  }
  0x51   : > { %p1545_p13 = scmp.ne.s32.totalorder %s1542_s8, 0 }
  0x52   : > { %s298_s13 = sand.u32 (!%p1545_p13), 1, %s1275_s25   ;;  %p1546_p2 = scmp.ne.s32.totalorder (!%p1545_p13), %s1541_s30, 0 }
  0x53   : > { %296 = sbr.rel (%p1545_p13) target bundleno = 329 (0x149), region = 36  ;;  %s930_s14 = sshll.u32 (!%p1545_p13), %s298_s13, 5 }
  0x54   : > { %s299_s19 = scalar_lea.sflag (!%p1545_p13), [#allocation3], %s298_s13  ;;  %s1455_s20 = scalar_lea.vmem (!%p1545_p13), [#allocation2], %s930_s14 }
  0x58   : > { %1258 = dma.done.wait (%p1546_p2), %s299_s19, 512  }
  0x59   : > { %1260 = vsyncadd (%p1546_p2), %s299_s19, 4294966784  ;;  %p1547_p5 = scmp.ne.s32.totalorder %s1540_s29, 0 }
  0x5b   : > { %1262 = dma.done.wait (%p1547_p5), [#allocation5], 1024  }
  0x5c   : > { %1264 = vsyncadd (%p1547_p5), [#allocation5], 4294966272 }
  0x5d   : > { %1266 = dma.done.wait (%p1547_p5), [#allocation8], 512  }
  0x5e   : > { %1268 = vsyncadd (%p1547_p5), [#allocation8], 4294966784  ;;  %s934_s8 = sshll.u32 %s919_s28, 2  ;;  %v1123_v0 = vld [vmem:[#allocation4 + $0x18] sm:$0xff]   ;;  %v1124_v1 = vld [vmem:[#allocation4 + $0x10] sm:$0xff]   ;;  %vm443_vm0 = vcmask 523264  }
  0x5f   : > { %p362_p7 = scmp.lt.s32.totalorder %s934_s8, 7  ;;  %1013 = vmatprep.subr.bf16.mxu0 %v1123_v0  ;;  %v1126_v2 = vld [vmem:[#allocation6 + $0x18] sm:$0xff]   ;;  %v1125_v3 = vld [vmem:[#allocation4 + $0x8] sm:$0xff]   ;;  %v1128_v4 = vld [vmem:[#allocation6 + $0x10] sm:$0xff]   ;;  %vm406_vm1 = vcmask 519168  }
  0x60   : > { %1014 = vmatpush3.bf16.msra.mxu0 %v1123_v0  ;;  %1025 = vmatprep.subr.bf16.mxu1 %v1126_v2  ;;  %v1127_v5 = vld [vmem:[#allocation4] sm:$0xff]   ;;  %v387_v7 = vld [vmem:[%s1455_s20 + $0x8] sm:$0xff]  ;;  %v388_v8 = vld [vmem:[%s1455_s20 + $0x10] sm:$0xff] }
  0x61   : > { %s1553_s8 = smov (!%p362_p7, %s934_s8), 7  ;;  %1015 = vmatprep.subr.bf16.mxu0 %v1124_v1  ;;  %1026 = vmatpush3.bf16.msra.mxu1 %v1126_v2  ;;  %v386_v6 = vld [vmem:[%s1455_s20] sm:$0xff]  ;;  %v980_v11 = vpack.c.bf16 %v387_v7, %v387_v7  ;;  %v389_v12 = vld [vmem:[%s1455_s20 + $0x18] sm:$0xff]  ;;  %v981_v13 = vpack.c.bf16 %v388_v8, %v388_v8  ;;  %v1129_v15 = vld [vmem:[#allocation6 + $0x8] sm:$0xff]  }
  0x62   : > { %s1471_s29 = sshll.u32 %s1553_s8, 2  ;;  %1027 = vmatprep.subr.bf16.mxu1 %v1128_v4  ;;  %v390_v9 = vpack.c.bf16 %v387_v7, %v386_v6  ;;  %v979_v10 = vpack.c.bf16 %v386_v6, %v386_v6  ;;  %v982_v14 = vpack.c.bf16 %v389_v12, %v389_v12  ;;  %v1131_v16 = vld [vmem:[#allocation6] sm:$0xff]   ;;  %v1130_v17 = vld [vmem:[#allocation7 + $0x18] sm:$0xff]   ;;  %v391_v18 = vpack.c.bf16 %v389_v12, %v388_v8  ;;  %v1132_v19 = vld [vmem:[#allocation7 + $0x10] sm:$0xff]  }
  0x63   : > { %s383_s30 = scalar_lea.vmem %s1535_s7, %s1471_s29  ;;  %v1133_v20 = vld [vmem:[#allocation7 + $0x8] sm:$0xff]   ;;  %v1134_v21 = vld [vmem:[#allocation7] sm:$0xff]   ;;  %s365_s18 = scalar_lea.vmem %s1532_s4, %s1471_s29 }
  0x64   : > { %1016 = vmatpush3.bf16.msra.mxu0 %v1124_v1  ;;  %407 = vst.msk [vmem:[%s383_s30] sm:$0xf] %vm406_vm1, %v979_v10  ;;  %1021 = vmatprep.mubr.msk.bf16.mxu0 %vm443_vm0, %v390_v9  ;;  %408 = vst.msk [vmem:[%s383_s30 + $0x4] sm:$0xf] %vm406_vm1, %v980_v11  ;;  %s371_s21 = scalar_lea.vmem %s1533_s5, %s1471_s29  ;;  %s377_s9 = scalar_lea.vmem %s1534_s6, %s1471_s29 }
  0x65   : > { %1017 = vmatprep.subr.bf16.mxu0 %v1125_v3  ;;  %1033 = vmatprep.mubr.msk.bf16.mxu1 %vm443_vm0, %v390_v9  ;;  %409 = vst.msk [vmem:[%s383_s30 + $0x8] sm:$0xf] %vm406_vm1, %v981_v13  ;;  %410 = vst.msk [vmem:[%s383_s30 + $0xc] sm:$0xf] %vm406_vm1, %v982_v14 }
  0x66   : > { %1028 = vmatpush3.bf16.msra.mxu1 %v1128_v4 }
  0x67   : > { %1029 = vmatprep.subr.bf16.mxu1 %v1129_v15 }
  0x68   : > { %1018 = vmatpush3.bf16.msra.mxu0 %v1125_v3 }
  0x69   : > { %1019 = vmatprep.subr.bf16.mxu0 %v1127_v5 }
  0x6a   : > { %1030 = vmatpush3.bf16.msra.mxu1 %v1129_v15 }
  0x6b   : > { %1031 = vmatprep.subr.bf16.mxu1 %v1131_v16 }
  0x6c   : > { %1020 = vmatpush3.bf16.msra.mxu0 %v1127_v5 }
  0x6d   : > { %1037 = vmatprep.subr.bf16.mxu0 %v1130_v17 }
  0x6e   : > { %1032 = vmatpush3.bf16.msra.mxu1 %v1131_v16 }
  0x6f   : > { %1022 = vmatmul.mubr.msk.bf16.vlgmr.msra.gmra.mxu0 %vm443_vm0, %v391_v18 }
  0x70   : > { %1038 = vmatpush3.bf16.msra.mxu0 %v1130_v17  ;;  %1045 = vmatprep.mubr.msk.bf16.mxu0 %vm443_vm0, %v390_v9 }
  0x71   : > { %1039 = vmatprep.subr.bf16.mxu0 %v1132_v19  ;;  %1034 = vmatmul.mubr.msk.bf16.vlgmr.msra.gmra.mxu1 %vm443_vm0, %v391_v18 }
  0x74   : > { %1040 = vmatpush3.bf16.msra.mxu0 %v1132_v19 }
  0x75   : > { %1041 = vmatprep.subr.bf16.mxu0 %v1133_v20 }
  0x78   : > { %1042 = vmatpush3.bf16.msra.mxu0 %v1133_v20 }
  0x79   : > { %1043 = vmatprep.subr.bf16.mxu0 %v1134_v21 }
  0x7c   : > { %1044 = vmatpush3.bf16.msra.mxu0 %v1134_v21 }
  0x7f   : > { %1046 = vmatmul.mubr.msk.bf16.vlgmr.msra.gmra.mxu0 %vm443_vm0, %v391_v18 }
 0x12f   : > { %v1023_v22 = vpop.f32.mrf.mxu0 }
 0x130   : > { %v985_v32 = vpack.c.bf16 %v1023_v22, %v1023_v22 }
 0x131   : > { %v484_v23 = vpop.f32.mrf.mxu0  ;;  %v1035_v25 = vpop.f32.mrf.mxu1 }
 0x132   : > { %v983_v24 = vpack.c.bf16 %v484_v23, %v484_v23  ;;  %v989_v34 = vpack.c.bf16 %v1035_v25, %v1035_v25  ;;  %517 = vst.msk [vmem:[%s365_s18 + $0x8] sm:$0xf] %vm406_vm1, %v985_v32 }
 0x133   : > { %v1024_v26 = vpop.f32.mrf.mxu0  ;;  %v585_v27 = vpop.f32.mrf.mxu1 }
 0x134   : > { %515 = vst.msk [vmem:[%s365_s18] sm:$0xf] %vm406_vm1, %v983_v24  ;;  %v987_v29 = vpack.c.bf16 %v585_v27, %v585_v27  ;;  %v986_v33 = vpack.c.bf16 %v1024_v26, %v1024_v26  ;;  %618 = vst.msk [vmem:[%s371_s21 + $0x8] sm:$0xf] %vm406_vm1, %v989_v34 }
 0x135   : > { %v487_v28 = vpop.f32.mrf.mxu0  ;;  %v1036_v31 = vpop.f32.mrf.mxu1 }
 0x136   : > { %v984_v30 = vpack.c.bf16 %v487_v28, %v487_v28  ;;  %616 = vst.msk [vmem:[%s371_s21] sm:$0xf] %vm406_vm1, %v987_v29  ;;  %v990_v36 = vpack.c.bf16 %v1036_v31, %v1036_v31  ;;  %518 = vst.msk [vmem:[%s365_s18 + $0xc] sm:$0xf] %vm406_vm1, %v986_v33 }
 0x137   : > { %v588_v35 = vpop.f32.mrf.mxu1 }
 0x138   : > { %516 = vst.msk [vmem:[%s365_s18 + $0x4] sm:$0xf] %vm406_vm1, %v984_v30  ;;  %v988_v37 = vpack.c.bf16 %v588_v35, %v588_v35  ;;  %619 = vst.msk [vmem:[%s371_s21 + $0xc] sm:$0xf] %vm406_vm1, %v990_v36 }
 0x13a   : > { %617 = vst.msk [vmem:[%s371_s21 + $0x4] sm:$0xf] %vm406_vm1, %v988_v37 }
 0x13f   : > { %v1047_v38 = vpop.f32.mrf.mxu0 }
 0x140   : > { %v993_v44 = vpack.c.bf16 %v1047_v38, %v1047_v38 }
 0x141   : > { %v686_v39 = vpop.f32.mrf.mxu0 }
 0x142   : > { %v991_v40 = vpack.c.bf16 %v686_v39, %v686_v39  ;;  %719 = vst.msk [vmem:[%s377_s9 + $0x8] sm:$0xf] %vm406_vm1, %v993_v44 }
 0x143   : > { %v1048_v41 = vpop.f32.mrf.mxu0 }
 0x144   : > { %717 = vst.msk [vmem:[%s377_s9] sm:$0xf] %vm406_vm1, %v991_v40  ;;  %v994_v45 = vpack.c.bf16 %v1048_v41, %v1048_v41 }
 0x145   : > { %v689_v42 = vpop.f32.mrf.mxu0 }
 0x146   : > { %v992_v43 = vpack.c.bf16 %v689_v42, %v689_v42  ;;  %720 = vst.msk [vmem:[%s377_s9 + $0xc] sm:$0xf] %vm406_vm1, %v994_v45 }
 0x148   : > { %718 = vst.msk [vmem:[%s377_s9 + $0x4] sm:$0xf] %vm406_vm1, %v992_v43 }
 0x149 PF: > { %p20_p3 = scmp.ge.s32.totalorder %s1406_s12, 4   ;;  %s1548_s24 = smov %s1275_s25 }
 0x14a   : > { %s1549_s25 = smov %s1279_s26  ;;  %s1550_s26 = smov %s1416_s11 }
 0x14b   : > { %s1551_s27 = smov %s1406_s12  ;;  %22 = sbr.rel (!%p20_p3) target bundleno = 5 (0x5), region = 124 }
 0x150   :  { %794 = vsyncpa [#allocation3], 1 }
 0x151   :  { %796 = vsyncpa [#allocation3 + $0x1], 1 }
 0x152   :  { %797 = vsyncpa [#allocation5], 1 }
 0x153   :  { %798 = vsyncpa [#allocation8], 1 }

// kernel: multi_attention.3
= control target key start
LH: loop header
LB: loop body
LE: loop exit
PB: predicated region body
PF: predicated region fallthrough
CT: control target
= control target key end

     0   :  { %s4622_s0 = inlined_call_operand.vmem [shape: bf16[64,64], index: 0, kind: input, shape index: {}]   ;;  %s4623_s1 = inlined_call_operand.vmem [shape: bf16[1,64,64], index: 1, kind: input, shape index: {}]   ;;  %s4624_s2 = inlined_call_operand.vmem [shape: bf16[1,64,64], index: 2, kind: input, shape index: {}]   ;;  %s4625_s3 = inlined_call_operand.vmem [shape: bf16[1,64,64], index: 3, kind: input, shape index: {}]   ;;  %s4626_s4 = inlined_call_operand.vmem [shape: bf16[1,64,64], index: 4, kind: input, shape index: {}]   ;;  %s4627_s5 = inlined_call_operand.vmem [shape: bf16[2,4,64,8], index: 5, kind: input, shape index: {}]   ;;  %s4628_s6 = inlined_call_operand.vmem [shape: bf16[2,4,64,8], index: 6, kind: input, shape index: {}]   ;;  %s4629_s7 = inlined_call_operand.vmem [shape: bf16[2,4,64,8], index: 7, kind: input, shape index: {}]   ;;  %s4630_s8 = inlined_call_operand.vmem [shape: bf16[2,4,8,64], index: 8, kind: input, shape index: {}]   ;;  %s4631_s9 = inlined_call_operand.hbm [shape: f32[64,64], index: 9, kind: output, shape index: {0}]   ;;  %s4632_s10 = inlined_call_operand.hbm [shape: f32[64,64], index: 10, kind: output, shape index: {1}]  }
   0x1   :  { %4645 = sst [smem:[#allocation20_spill]] %s4622_s0 }
   0x2   :  { %4646 = sst [smem:[#allocation21_spill]] %s4627_s5 }
   0x3   :  { %4647 = sst [smem:[#allocation22_spill]] %s4631_s9 }
   0x4   :  { %4648 = sst [smem:[#allocation23_spill]] %s4632_s10 }
   0x5   :  { %16 = vsyncpa [#allocation5], 0 }
   0x6   :  { %18 = vsyncpa [#allocation5 + $0x1], 0 }
   0x7   :  { %19 = vsyncpa [#allocation7], 0 }
   0x8   :  { %21 = vsyncpa [#allocation7 + $0x1], 0  ;;  %s4064_s13 = smov 0   ;;  %s4066_s14 = smov 0  }
   0x9   :  { %s4068_s15 = smov 0   ;;  %s4070_s16 = smov 0  }
   0xa   :  { %s4072_s17 = smov 0   ;;  %s4074_s18 = smov 0  }
   0xb   :  { %s4076_s19 = smov 0   ;;  %s4078_s20 = smov 0  }
   0xc LB: > { %4649 = sst [smem:[#allocation10_spill]] %s3973_s13  ;;  %s2992_s21 = sadd.s32 4294967295, %s4001_s20   ;;  %s4001_s20 = sphi %s4078_s20, %s27_s20   ;;  %s3997_s19 = sphi %s4076_s19, %s4676_s19   ;;  %s3993_s18 = sphi %s4074_s18, %s4675_s18   ;;  %s3989_s17 = sphi %s4072_s17, %s4674_s17   ;;  %s3985_s16 = sphi %s4070_s16, %s4673_s16   ;;  %s3981_s15 = sphi %s4068_s15, %s4672_s15   ;;  %s3977_s14 = sphi %s4066_s14, %s4671_s14   ;;  %s3973_s13 = sphi %s4064_s13, %s4670_s13  }
   0xd   : > { %4650 = sst [smem:[#allocation11_spill]] %s3977_s14  ;;  %s36_s22 = sadd.s32 1, %s3993_s18 }
   0xe   : > { %4651 = sst [smem:[#allocation12_spill]] %s3981_s15  ;;  %s39_s23 = sadd.s32 1, %s3997_s19 }
   0xf   : > { %4652 = sst [smem:[#allocation13_spill]] %s3993_s18  ;;  %p37_p0 = scmp.ge.s32.totalorder %s36_s22, 2 }
  0x10   : > { %4653 = sst [smem:[#allocation14_spill]] %s3997_s19  ;;  %s2996_s24 = sshll.u32 %s3997_s19, 1 }
  0x11   : > { %4654 = sst [smem:[#allocation15_spill]] %s4001_s20  ;;  %s2993_s25 = sadd.s32 4294967294, %s4001_s20  }
  0x12   : > { %s267_s26 = sadd.s32 %s3993_s18, %s2996_s24  ;;  %s4678_s22 = smov (%p37_p0, %s36_s22), 0 }
  0x13   : > { %4655 = sst [smem:[#allocation16_spill]] %s4678_s22  ;;  %s4680_s23 = smov (!%p37_p0, %s39_s23), %s3997_s19 }
  0x14   : > { %p283_p1 = scmp.ne.s32.totalorder %s3981_s15, %s3977_s14  ;;  %p284_p2 = scmp.eq.s32.totalorder %s2992_s21, 3 }
  0x15   : > { %p41_p3 = scmp.ge.s32.totalorder %s4680_s23, 2  ;;  %p289_p4 = scmp.ne.s32.totalorder %s3977_s14, %s3973_s13 }
  0x16   : > { %p4117_p5 = por %p284_p2, %p283_p1  ;;  %p290_p6 = scmp.eq.s32.totalorder %s2993_s25, 3 }
  0x17   : > { %s4682_s23 = smov (%p41_p3, %s4680_s23), 0  ;;  %p3002_p8 = scmp.ge.s32.totalorder %s4001_s20, 1 }
  0x18   : > { %4657 = sst [smem:[#allocation17_spill]] %s4682_s23  ;;  %p4123_p7 = por %p290_p6, %p289_p4 }
  0x19   : > { %s2997_s29 = sshll.u32 %s4682_s23, 1  ;;  %p401_p9 = scmp.lt.s32.totalorder %s4001_s20, 5 }
  0x1a   : > { %s4658_s28 = scalar_select %p4123_p7, 1, 0 }
  0x1b   : > { %s269_s30 = sadd.s32 %s2997_s29, %s4678_s22  ;;  %s273_s11 = sadd.s32 1, %s3981_s15 }
  0x1c   : > { %4659 = sst [smem:[#allocation18_spill]] %s4658_s28  ;;  %s270_s12 = ssub.s32 %s267_s26, %s269_s30 }
  0x1d   : > { %p402_p10 = pnand %p3002_p8, %p401_p9  ;;  %p271_p11 = scmp.eq.s32.totalorder %s270_s12, 0 }
  0x1e   : > { %s4136_s24 = sand.u32 (!%p402_p10), 1, %s3977_s14   ;;  %s3005_s25 = sshll.u32 (!%p402_p10), %s3989_s17, 2 }
  0x1f   : > { %s4133_s21 = scalar_select %p271_p11, %s3981_s15, %s273_s11  }
  0x20   : > { %405 = sbr.rel (%p402_p10) target bundleno = 3574 (0xdf6), region = 56  ;;  %p472_p12 = scmp.lt.s32.totalorder (!%p402_p10), %s3005_s25, 7 }
  0x21   : > { %4660 = sst [smem:[#allocation19_spill]] %s4133_s21  ;;  %s3007_s26 = sshll.u32 (!%p402_p10), %s3989_s17, 1 }
  0x22   : > { %p487_p13 = scmp.lt.s32.totalorder (!%p402_p10), %s3989_s17, 1  ;;  %s4143_s30 = sadd.s32 (!%p402_p10), %s3985_s16, %s3007_s26 }
  0x23   : > { %s4661_s0 = sld [smem:[#allocation20_spill]] (!%p402_p10)  ;;  %s3008_s19 = sshll.u32 (!%p402_p10), %s4143_s30, 1 }
  0x24   : > { %p480_p0 = scmp.lt.s32.totalorder (!%p402_p10), %s3008_s19, 7  ;;  %s3018_s18 = sshll.u32 (!%p402_p10), %s3985_s16, 4 }
  0x25   : > { %s4684_s25 = smov (!%p472_p12, %s3005_s25), 7  ;;  %s4686_s17 = smov (!%p487_p13, %s3989_s17), 1 }
  0x26   : > { %s3006_s29 = sshll.u32 %s4684_s25, 2  ;;  %s4688_s19 = smov (!%p480_p0, %s3008_s19), 7 }
  0x27   : > { %s3253_s23 = sshll.u32 %s4686_s17, 7  ;;  %s3256_s25 = sshll.u32 %s4686_s17, 4 }
  0x28   : > { %s3009_s26 = sshll.u32 %s4688_s19, 2  ;;  %s4662_s5 = sld [smem:[#allocation21_spill]] }
  0x29   : > { %s475_s22 = scalar_lea.vmem %s4661_s0, %s3006_s29  ;;  %s4159_s0 = scalar_lea.vmem %s4623_s1, %s3009_s26 }
  0x2a   : > { %v515_v0 = vld [vmem:[%s475_s22] sm:$0xf]  ;;  %v516_v1 = vld [vmem:[%s475_s22 + $0x4] sm:$0xf]  ;;  %v517_v2 = vld [vmem:[%s475_s22 + $0x8] sm:$0xf]  ;;  %s4164_s13 = scalar_lea.vmem %s4628_s6, %s3253_s23  ;;  %s4169_s17 = scalar_lea.vmem %s4629_s7, %s3253_s23 }
  0x2b   : > { %v518_v3 = vld [vmem:[%s475_s22 + $0xc] sm:$0xf]  ;;  %s4174_s15 = scalar_lea.vmem %s4630_s8, %s3256_s25  ;;  %s519_s21 = sshra.s32 %s3018_s18, 3 }
  0x2c   : > { %s4663_s14 = sshll.u32 %s4136_s24, 4  ;;  %p3020_p1 = scmp.ne.s32.totalorder %s3985_s16, 0 }
  0x2d   : > { %s4182_s28 = scalar_lea.vmem [#allocation4], %s4663_s14  ;;  %s4664_s26 = smov %s4663_s14 }
  0x2e   : > { %s4154_s11 = scalar_lea.vmem %s4662_s5, %s3253_s23  ;;  %s3019_s5 = sshll.u32 %s519_s21, 2 }
  0x2f   : > { %s522_s29 = scalar_lea.vmem %s475_s22, %s3019_s5  ;;  %s4186_s12 = scalar_lea.vmem [#allocation6], %s4664_s26 }
  0x30   : > { %v4176_v4 = vld [vmem:[%s522_s29] sm:$0xf]  ;;  %v4178_v5 = vld [vmem:[%s522_s29 + $0x4] sm:$0xf]  ;;  %528 = sbr.rel (%p3020_p1) target bundleno = 321 (0x141), region = 60 }
  0x35   : > { %v3754_v6 = vld [vmem:[%s4164_s13 + $0x18] sm:$0xff]   ;;  %v4190_v7 = vcombine.low %v515_v0, %v516_v1  ;;  %vm571_vm0 = vcmask 523264   ;;  %v3756_v9 = vld [vmem:[%s4164_s13 + $0x10] sm:$0xff]   ;;  %v3758_v11 = vld [vmem:[%s4164_s13 + $0x8] sm:$0xff]   ;;  %v4205_v17 = vcombine.low %v517_v2, %v518_v3  ;;  %vm643_vm1 = vcmask 60416  }
  0x36   : > { %v3755_v8 = vld [vmem:[%s4169_s17 + $0x18] sm:$0xff]   ;;  %3406 = vmatprep.subr.bf16.mxu0 %v3754_v6  ;;  %v3757_v10 = vld [vmem:[%s4169_s17 + $0x10] sm:$0xff]   ;;  %v3759_v12 = vld [vmem:[%s4169_s17 + $0x8] sm:$0xff]  }
  0x37   : > { %3414 = vmatprep.mubr.msk.bf16.mxu0 %vm571_vm0, %v4190_v7  ;;  %3418 = vmatprep.subr.bf16.mxu1 %v3755_v8  ;;  %v3760_v13 = vld [vmem:[%s4164_s13] sm:$0xff]   ;;  %v3762_v15 = vld [vmem:[%s4164_s13 + $0x38] sm:$0xff]   ;;  %v3764_v18 = vld [vmem:[%s4164_s13 + $0x30] sm:$0xff]  }
  0x38   : > { %3407 = vmatpush3.bf16.msra.mxu0 %v3754_v6  ;;  %3419 = vmatpush3.bf16.msra.mxu1 %v3755_v8  ;;  %v3761_v14 = vld [vmem:[%s4169_s17] sm:$0xff]   ;;  %v3763_v16 = vld [vmem:[%s4169_s17 + $0x38] sm:$0xff]   ;;  %v3765_v19 = vld [vmem:[%s4169_s17 + $0x30] sm:$0xff]  }
  0x39   : > { %3408 = vmatprep.subr.bf16.mxu0 %v3756_v9  ;;  %3420 = vmatprep.subr.bf16.mxu1 %v3757_v10  ;;  %v3766_v20 = vld [vmem:[%s4164_s13 + $0x28] sm:$0xff]   ;;  %v3768_v22 = vld [vmem:[%s4164_s13 + $0x20] sm:$0xff]   ;;  %v3770_v24 = vld [vmem:[%s4164_s13 + $0x58] sm:$0xff]  }
  0x3a   : > { %3426 = vmatprep.mubr.msk.bf16.mxu1 %vm571_vm0, %v4190_v7  ;;  %v3767_v21 = vld [vmem:[%s4169_s17 + $0x28] sm:$0xff]   ;;  %v3769_v23 = vld [vmem:[%s4169_s17 + $0x20] sm:$0xff]   ;;  %v3771_v25 = vld [vmem:[%s4169_s17 + $0x58] sm:$0xff]  }
  0x3b   : > { %v3772_v26 = vld [vmem:[%s4164_s13 + $0x50] sm:$0xff]   ;;  %v3774_v28 = vld [vmem:[%s4164_s13 + $0x48] sm:$0xff]   ;;  %v3776_v30 = vld [vmem:[%s4164_s13 + $0x40] sm:$0xff]  }
  0x3c   : > { %3409 = vmatpush3.bf16.msra.mxu0 %v3756_v9  ;;  %3421 = vmatpush3.bf16.msra.mxu1 %v3757_v10  ;;  %v3773_v27 = vld [vmem:[%s4169_s17 + $0x50] sm:$0xff]   ;;  %v3775_v29 = vld [vmem:[%s4169_s17 + $0x48] sm:$0xff]   ;;  %v3777_v31 = vld [vmem:[%s4169_s17 + $0x40] sm:$0xff]  }
  0x3d   : > { %3410 = vmatprep.subr.bf16.mxu0 %v3758_v11  ;;  %3422 = vmatprep.subr.bf16.mxu1 %v3759_v12  ;;  %v3778_v32 = vld [vmem:[%s4164_s13 + $0x78] sm:$0xff]   ;;  %v3780_v34 = vld [vmem:[%s4164_s13 + $0x70] sm:$0xff]   ;;  %v3782_v36 = vld [vmem:[%s4164_s13 + $0x68] sm:$0xff]  }
  0x3e   : > { %v3779_v33 = vld [vmem:[%s4169_s17 + $0x78] sm:$0xff]   ;;  %v3781_v35 = vld [vmem:[%s4169_s17 + $0x70] sm:$0xff]   ;;  %v3783_v37 = vld [vmem:[%s4169_s17 + $0x68] sm:$0xff]  }
  0x3f   : > { %v3784_v38 = vld [vmem:[%s4164_s13 + $0x60] sm:$0xff]  }
  0x40   : > { %3411 = vmatpush3.bf16.msra.mxu0 %v3758_v11  ;;  %3423 = vmatpush3.bf16.msra.mxu1 %v3759_v12  ;;  %v3785_v39 = vld [vmem:[%s4169_s17 + $0x60] sm:$0xff]  }
  0x41   : > { %3412 = vmatprep.subr.bf16.mxu0 %v3760_v13  ;;  %3424 = vmatprep.subr.bf16.mxu1 %v3761_v14 }
  0x44   : > { %3413 = vmatpush3.bf16.msra.mxu0 %v3760_v13  ;;  %3425 = vmatpush3.bf16.msra.mxu1 %v3761_v14 }
  0x45   : > { %3430 = vmatprep.subr.bf16.mxu0 %v3762_v15  ;;  %3442 = vmatprep.subr.bf16.mxu1 %v3763_v16 }
  0x47   : > { %3415 = vmatmul.mubr.msk.bf16.vlgmr.msra.gmra.mxu0 %vm571_vm0, %v4205_v17  ;;  %3427 = vmatmul.mubr.msk.bf16.vlgmr.msra.gmra.mxu1 %vm571_vm0, %v4205_v17 }
  0x48   : > { %3431 = vmatpush3.bf16.msra.mxu0 %v3762_v15  ;;  %3443 = vmatpush3.bf16.msra.mxu1 %v3763_v16 }
  0x49   : > { %3432 = vmatprep.subr.bf16.mxu0 %v3764_v18  ;;  %3444 = vmatprep.subr.bf16.mxu1 %v3765_v19 }
  0x4a   : > { %3438 = vmatprep.mubr.msk.bf16.mxu0 %vm571_vm0, %v4190_v7  ;;  %3450 = vmatprep.mubr.msk.bf16.mxu1 %vm571_vm0, %v4190_v7 }
  0x4c   : > { %3433 = vmatpush3.bf16.msra.mxu0 %v3764_v18  ;;  %3445 = vmatpush3.bf16.msra.mxu1 %v3765_v19 }
  0x4d   : > { %3434 = vmatprep.subr.bf16.mxu0 %v3766_v20  ;;  %3446 = vmatprep.subr.bf16.mxu1 %v3767_v21 }
  0x50   : > { %3435 = vmatpush3.bf16.msra.mxu0 %v3766_v20  ;;  %3447 = vmatpush3.bf16.msra.mxu1 %v3767_v21 }
  0x51   : > { %3436 = vmatprep.subr.bf16.mxu0 %v3768_v22  ;;  %3448 = vmatprep.subr.bf16.mxu1 %v3769_v23 }
  0x54   : > { %3437 = vmatpush3.bf16.msra.mxu0 %v3768_v22  ;;  %3449 = vmatpush3.bf16.msra.mxu1 %v3769_v23 }
  0x55   : > { %3454 = vmatprep.subr.bf16.mxu0 %v3770_v24  ;;  %3466 = vmatprep.subr.bf16.mxu1 %v3771_v25 }
  0x57   : > { %3439 = vmatmul.mubr.msk.bf16.vlgmr.msra.gmra.mxu0 %vm571_vm0, %v4205_v17  ;;  %3451 = vmatmul.mubr.msk.bf16.vlgmr.msra.gmra.mxu1 %vm571_vm0, %v4205_v17 }
  0x58   : > { %3455 = vmatpush3.bf16.msra.mxu0 %v3770_v24  ;;  %3467 = vmatpush3.bf16.msra.mxu1 %v3771_v25 }
  0x59   : > { %3456 = vmatprep.subr.bf16.mxu0 %v3772_v26  ;;  %3468 = vmatprep.subr.bf16.mxu1 %v3773_v27 }
  0x5a   : > { %3462 = vmatprep.mubr.msk.bf16.mxu0 %vm571_vm0, %v4190_v7  ;;  %3474 = vmatprep.mubr.msk.bf16.mxu1 %vm571_vm0, %v4190_v7 }
  0x5c   : > { %3457 = vmatpush3.bf16.msra.mxu0 %v3772_v26  ;;  %3469 = vmatpush3.bf16.msra.mxu1 %v3773_v27 }
  0x5d   : > { %3458 = vmatprep.subr.bf16.mxu0 %v3774_v28  ;;  %3470 = vmatprep.subr.bf16.mxu1 %v3775_v29 }
  0x60   : > { %3459 = vmatpush3.bf16.msra.mxu0 %v3774_v28  ;;  %3471 = vmatpush3.bf16.msra.mxu1 %v3775_v29 }
  0x61   : > { %3460 = vmatprep.subr.bf16.mxu0 %v3776_v30  ;;  %3472 = vmatprep.subr.bf16.mxu1 %v3777_v31 }
  0x64   : > { %3461 = vmatpush3.bf16.msra.mxu0 %v3776_v30  ;;  %3473 = vmatpush3.bf16.msra.mxu1 %v3777_v31 }
  0x65   : > { %3478 = vmatprep.subr.bf16.mxu0 %v3778_v32  ;;  %3490 = vmatprep.subr.bf16.mxu1 %v3779_v33 }
  0x67   : > { %3463 = vmatmul.mubr.msk.bf16.vlgmr.msra.gmra.mxu0 %vm571_vm0, %v4205_v17  ;;  %3475 = vmatmul.mubr.msk.bf16.vlgmr.msra.gmra.mxu1 %vm571_vm0, %v4205_v17 }
  0x68   : > { %3479 = vmatpush3.bf16.msra.mxu0 %v3778_v32  ;;  %3491 = vmatpush3.bf16.msra.mxu1 %v3779_v33 }
  0x69   : > { %3480 = vmatprep.subr.bf16.mxu0 %v3780_v34  ;;  %3492 = vmatprep.subr.bf16.mxu1 %v3781_v35 }
  0x6a   : > { %3486 = vmatprep.mubr.msk.bf16.mxu0 %vm571_vm0, %v4190_v7  ;;  %3498 = vmatprep.mubr.msk.bf16.mxu1 %vm571_vm0, %v4190_v7 }
  0x6c   : > { %3481 = vmatpush3.bf16.msra.mxu0 %v3780_v34  ;;  %3493 = vmatpush3.bf16.msra.mxu1 %v3781_v35 }
  0x6d   : > { %3482 = vmatprep.subr.bf16.mxu0 %v3782_v36  ;;  %3494 = vmatprep.subr.bf16.mxu1 %v3783_v37 }
  0x70   : > { %3483 = vmatpush3.bf16.msra.mxu0 %v3782_v36  ;;  %3495 = vmatpush3.bf16.msra.mxu1 %v3783_v37 }
  0x71   : > { %3484 = vmatprep.subr.bf16.mxu0 %v3784_v38  ;;  %3496 = vmatprep.subr.bf16.mxu1 %v3785_v39 }
  0x74   : > { %3485 = vmatpush3.bf16.msra.mxu0 %v3784_v38  ;;  %3497 = vmatpush3.bf16.msra.mxu1 %v3785_v39 }
  0x77   : > { %3487 = vmatmul.mubr.msk.bf16.vlgmr.msra.gmra.mxu0 %vm571_vm0, %v4205_v17  ;;  %3499 = vmatmul.mubr.msk.bf16.vlgmr.msra.gmra.mxu1 %vm571_vm0, %v4205_v17 }
 0x107   : > { %v3416_v40 = vpop.f32.mrf.mxu0  ;;  %v3428_v42 = vpop.f32.mrf.mxu1 }
 0x108   : > { %v3259_v41 = vpack.c.bf16 %v3416_v40, %v3416_v40  ;;  %v3263_v43 = vpack.c.bf16 %v3428_v42, %v3428_v42 }
 0x109   : > { %v612_v44 = vpop.f32.mrf.mxu0  ;;  %v714_v46 = vpop.f32.mrf.mxu1 }
 0x10a   : > { %646 = vst.msk [vmem:[#allocation2 + $0x8] sm:$0xf] %vm643_vm1, %v3259_v41  ;;  %v3257_v45 = vpack.c.bf16 %v612_v44, %v612_v44  ;;  %747 = vst.msk [vmem:[#allocation3 + $0x8] sm:$0xf] %vm643_vm1, %v3263_v43  ;;  %v3261_v47 = vpack.c.bf16 %v714_v46, %v714_v46 }
 0x10b   : > { %v3417_v48 = vpop.f32.mrf.mxu0  ;;  %v3429_v50 = vpop.f32.mrf.mxu1 }
 0x10c   : > { %644 = vst.msk [vmem:[#allocation2] sm:$0xf] %vm643_vm1, %v3257_v45  ;;  %v3260_v49 = vpack.c.bf16 %v3417_v48, %v3417_v48  ;;  %745 = vst.msk [vmem:[#allocation3] sm:$0xf] %vm643_vm1, %v3261_v47  ;;  %v3264_v51 = vpack.c.bf16 %v3429_v50, %v3429_v50 }
 0x10d   : > { %v615_v52 = vpop.f32.mrf.mxu0  ;;  %v717_v54 = vpop.f32.mrf.mxu1 }
 0x10e   : > { %647 = vst.msk [vmem:[#allocation2 + $0xc] sm:$0xf] %vm643_vm1, %v3260_v49  ;;  %v3258_v53 = vpack.c.bf16 %v615_v52, %v615_v52  ;;  %748 = vst.msk [vmem:[#allocation3 + $0xc] sm:$0xf] %vm643_vm1, %v3264_v51  ;;  %v3262_v55 = vpack.c.bf16 %v717_v54, %v717_v54 }
 0x110   : > { %645 = vst.msk [vmem:[#allocation2 + $0x4] sm:$0xf] %vm643_vm1, %v3258_v53  ;;  %746 = vst.msk [vmem:[#allocation3 + $0x4] sm:$0xf] %vm643_vm1, %v3262_v55 }
 0x117   : > { %v3440_v56 = vpop.f32.mrf.mxu0  ;;  %v3452_v58 = vpop.f32.mrf.mxu1 }
 0x118   : > { %v3267_v57 = vpack.c.bf16 %v3440_v56, %v3440_v56  ;;  %v3271_v59 = vpack.c.bf16 %v3452_v58, %v3452_v58 }
 0x119   : > { %v816_v60 = vpop.f32.mrf.mxu0  ;;  %v919_v62 = vpop.f32.mrf.mxu1 }
 0x11a   : > { %850 = vst.msk [vmem:[#allocation2 + $0x18] sm:$0xf] %vm643_vm1, %v3267_v57  ;;  %v3265_v61 = vpack.c.bf16 %v816_v60, %v816_v60  ;;  %953 = vst.msk [vmem:[#allocation3 + $0x18] sm:$0xf] %vm643_vm1, %v3271_v59  ;;  %v3269_v63 = vpack.c.bf16 %v919_v62, %v919_v62 }
 0x11b   : > { %v3441_v0 = vpop.f32.mrf.mxu0  ;;  %v3453_v2 = vpop.f32.mrf.mxu1 }
 0x11c   : > { %848 = vst.msk [vmem:[#allocation2 + $0x10] sm:$0xf] %vm643_vm1, %v3265_v61  ;;  %v3268_v1 = vpack.c.bf16 %v3441_v0, %v3441_v0  ;;  %951 = vst.msk [vmem:[#allocation3 + $0x10] sm:$0xf] %vm643_vm1, %v3269_v63  ;;  %v3272_v3 = vpack.c.bf16 %v3453_v2, %v3453_v2 }
 0x11d   : > { %v819_v6 = vpop.f32.mrf.mxu0  ;;  %v922_v8 = vpop.f32.mrf.mxu1 }
 0x11e   : > { %851 = vst.msk [vmem:[#allocation2 + $0x1c] sm:$0xf] %vm643_vm1, %v3268_v1  ;;  %v3266_v7 = vpack.c.bf16 %v819_v6, %v819_v6  ;;  %954 = vst.msk [vmem:[#allocation3 + $0x1c] sm:$0xf] %vm643_vm1, %v3272_v3  ;;  %v3270_v9 = vpack.c.bf16 %v922_v8, %v922_v8 }
 0x120   : > { %849 = vst.msk [vmem:[#allocation2 + $0x14] sm:$0xf] %vm643_vm1, %v3266_v7  ;;  %952 = vst.msk [vmem:[#allocation3 + $0x14] sm:$0xf] %vm643_vm1, %v3270_v9 }
 0x127   : > { %v3464_v10 = vpop.f32.mrf.mxu0  ;;  %v3476_v12 = vpop.f32.mrf.mxu1 }
 0x128   : > { %v3275_v11 = vpack.c.bf16 %v3464_v10, %v3464_v10  ;;  %v3279_v13 = vpack.c.bf16 %v3476_v12, %v3476_v12 }
 0x129   : > { %v1022_v14 = vpop.f32.mrf.mxu0  ;;  %v1125_v16 = vpop.f32.mrf.mxu1 }
 0x12a   : > { %1056 = vst.msk [vmem:[#allocation2 + $0x28] sm:$0xf] %vm643_vm1, %v3275_v11  ;;  %v3273_v15 = vpack.c.bf16 %v1022_v14, %v1022_v14  ;;  %1159 = vst.msk [vmem:[#allocation3 + $0x28] sm:$0xf] %vm643_vm1, %v3279_v13  ;;  %v3277_v17 = vpack.c.bf16 %v1125_v16, %v1125_v16 }
 0x12b   : > { %v3465_v18 = vpop.f32.mrf.mxu0  ;;  %v3477_v20 = vpop.f32.mrf.mxu1 }
 0x12c   : > { %1054 = vst.msk [vmem:[#allocation2 + $0x20] sm:$0xf] %vm643_vm1, %v3273_v15  ;;  %v3276_v19 = vpack.c.bf16 %v3465_v18, %v3465_v18  ;;  %1157 = vst.msk [vmem:[#allocation3 + $0x20] sm:$0xf] %vm643_vm1, %v3277_v17  ;;  %v3280_v21 = vpack.c.bf16 %v3477_v20, %v3477_v20 }
 0x12d   : > { %v1025_v22 = vpop.f32.mrf.mxu0  ;;  %v1128_v24 = vpop.f32.mrf.mxu1 }
 0x12e   : > { %1057 = vst.msk [vmem:[#allocation2 + $0x2c] sm:$0xf] %vm643_vm1, %v3276_v19  ;;  %v3274_v23 = vpack.c.bf16 %v1025_v22, %v1025_v22  ;;  %1160 = vst.msk [vmem:[#allocation3 + $0x2c] sm:$0xf] %vm643_vm1, %v3280_v21  ;;  %v3278_v25 = vpack.c.bf16 %v1128_v24, %v1128_v24 }
 0x130   : > { %1055 = vst.msk [vmem:[#allocation2 + $0x24] sm:$0xf] %vm643_vm1, %v3274_v23  ;;  %1158 = vst.msk [vmem:[#allocation3 + $0x24] sm:$0xf] %vm643_vm1, %v3278_v25 }
 0x137   : > { %v3488_v26 = vpop.f32.mrf.mxu0  ;;  %v3500_v28 = vpop.f32.mrf.mxu1 }
 0x138   : > { %v3283_v27 = vpack.c.bf16 %v3488_v26, %v3488_v26  ;;  %v3287_v29 = vpack.c.bf16 %v3500_v28, %v3500_v28 }
 0x139   : > { %v1228_v30 = vpop.f32.mrf.mxu0  ;;  %v1331_v32 = vpop.f32.mrf.mxu1 }
 0x13a   : > { %1262 = vst.msk [vmem:[#allocation2 + $0x38] sm:$0xf] %vm643_vm1, %v3283_v27  ;;  %v3281_v31 = vpack.c.bf16 %v1228_v30, %v1228_v30  ;;  %1365 = vst.msk [vmem:[#allocation3 + $0x38] sm:$0xf] %vm643_vm1, %v3287_v29  ;;  %v3285_v33 = vpack.c.bf16 %v1331_v32, %v1331_v32 }
 0x13b   : > { %v3489_v34 = vpop.f32.mrf.mxu0  ;;  %v3501_v36 = vpop.f32.mrf.mxu1 }
 0x13c   : > { %1260 = vst.msk [vmem:[#allocation2 + $0x30] sm:$0xf] %vm643_vm1, %v3281_v31  ;;  %v3284_v35 = vpack.c.bf16 %v3489_v34, %v3489_v34  ;;  %1363 = vst.msk [vmem:[#allocation3 + $0x30] sm:$0xf] %vm643_vm1, %v3285_v33  ;;  %v3288_v37 = vpack.c.bf16 %v3501_v36, %v3501_v36 }
 0x13d   : > { %v1231_v38 = vpop.f32.mrf.mxu0  ;;  %v1334_v40 = vpop.f32.mrf.mxu1 }
 0x13e   : > { %1263 = vst.msk [vmem:[#allocation2 + $0x3c] sm:$0xf] %vm643_vm1, %v3284_v35  ;;  %v3282_v39 = vpack.c.bf16 %v1231_v38, %v1231_v38  ;;  %1366 = vst.msk [vmem:[#allocation3 + $0x3c] sm:$0xf] %vm643_vm1, %v3288_v37  ;;  %v3286_v41 = vpack.c.bf16 %v1334_v40, %v1334_v40 }
 0x140   : > { %1261 = vst.msk [vmem:[#allocation2 + $0x34] sm:$0xf] %vm643_vm1, %v3282_v39  ;;  %1364 = vst.msk [vmem:[#allocation3 + $0x34] sm:$0xf] %vm643_vm1, %v3286_v41 }
 0x141 PF: > { %v3786_v42 = vld [vmem:[%s4624_s2 + $0x18] sm:$0xff]   ;;  %v4003_v43 = vmov 0.0   ;;  %vm1410_vm2 = vcmask 523264   ;;  %v3787_v44 = vld [vmem:[%s4624_s2 + $0x10] sm:$0xff]   ;;  %v3788_v46 = vld [vmem:[%s4624_s2 + $0x8] sm:$0xff]   ;;  %vm4004_vm3 = vmmov 0   ;;  %v4346_v2 = vcombine.low %v4176_v4, %v4178_v5 }
 0x142   : > { %3502 = vmatprep.subr.bf16.mxu0 %v4003_v43  ;;  %3514 = vmatprep.subr.bf16.mxu1 %v4003_v43  ;;  %v1424_v45 = vsel %vm1410_vm2, %v3786_v42, 0  ;;  %v3789_v47 = vld [vmem:[%s4624_s2] sm:$0xff]   ;;  %v1421_v48 = vsel %vm1410_vm2, %v3787_v44, 0  ;;  %v1418_v49 = vsel %vm1410_vm2, %v3788_v46, 0  ;;  %v3791_v58 = vld [vmem:[%s4625_s3 + $0x18] sm:$0xff]   ;;  %v3792_v59 = vld [vmem:[%s4625_s3 + $0x10] sm:$0xff]  }
 0x143   : > { %3503 = vmatpush3.bf16.xpose.msra.mxu0 %v1424_v45  ;;  %v1415_v50 = vsel %vm1410_vm2, %v3789_v47, 0  ;;  %3510 = vmatprep.mubr.msk.bf16.mxu0 %vm4004_vm3, %v4003_v43  ;;  %v3790_v51 = vld [vmem:[%s4159_s0] sm:$0xff]   ;;  %v3793_v60 = vld [vmem:[%s4625_s3 + $0x8] sm:$0xff]   ;;  %v3794_v61 = vld [vmem:[%s4154_s11 + $0x18] sm:$0xff]   ;;  %vm1743_vm4 = vcmask 64512   ;;  %vm1794_vm5 = vcmask 261120  }
 0x144   : > { %3504 = vmatprep.subr.bf16.mxu0 %v4003_v43  ;;  %3522 = vmatprep.mubr.msk.bf16.mxu1 %vm4004_vm3, %v4003_v43  ;;  %v3795_v62 = vld [vmem:[%s4625_s3] sm:$0xff]   ;;  %v3796_v63 = vld [vmem:[%s4154_s11 + $0x10] sm:$0xff]   ;;  %v3797_v0 = vld [vmem:[%s4154_s11 + $0x8] sm:$0xff]   ;;  %vm2106_vm6 = vcmask 1043456   ;;  %s4665_s0 = sld [smem:[#allocation23_spill]]  ;;  %s2821_s25 = sshll.u32 %s4186_s12, 4  ;;  %s4526_s25 = int_to_ptr.vmem [resolvable:$true] %s2821_s25 }
 0x145   : > { %3515 = vmatpush3.bf16.msra.mxu1 %v3791_v58  ;;  %v3798_v1 = vld [vmem:[%s4154_s11] sm:$0xff]   ;;  %v3799_v14 = vld [vmem:[%s4626_s4 + $0x18] sm:$0xff]   ;;  %v3800_v15 = vld [vmem:[%s4626_s4 + $0x10] sm:$0xff]   ;;  %s2788_s17 = scalar_lea.sflag [#allocation7], %s4136_s24  ;;  %s3879_s19 = scalar_lea.vmem %s4526_s25, 256 }
 0x146   : > { %3516 = vmatprep.subr.bf16.mxu1 %v4003_v43  ;;  %v3801_v16 = vld [vmem:[%s4626_s4 + $0x8] sm:$0xff]   ;;  %v3802_v17 = vld [vmem:[%s4626_s4] sm:$0xff]   ;;  %v3805_v40 = vld [vmem:[%s4154_s11 + $0x38] sm:$0xff]   ;;  %p3880_p2 = scmp.ne.s32.totalorder %s4526_s25, %s3879_s19  ;;  %s4005_s21 = smov [#allocation6]  }
 0x147   : > { %v3803_v31 = vld [vmem:[#allocation2 + $0x8] sm:$0xff]   ;;  %v3804_v38 = vld [vmem:[#allocation2] sm:$0xff]   ;;  %v3806_v41 = vld [vmem:[%s4154_s11 + $0x30] sm:$0xff]   ;;  %s3883_s29 = sshll.u32 %s4005_s21, 4  ;;  %s3884_s29 = int_to_ptr.vmem [resolvable:$false] %s3883_s29 }
 0x148   : > { %v1751_v37 = vsel %vm1743_vm4, %v3803_v31, 0  ;;  %v1748_v39 = vsel %vm1743_vm4, %v3804_v38, 0  ;;  %v3807_v42 = vld [vmem:[%s4154_s11 + $0x28] sm:$0xff]   ;;  %v3808_v44 = vld [vmem:[%s4154_s11 + $0x20] sm:$0xff]   ;;  %p3881_p3 = pnand %p3880_p2, %p4117_p5  ;;  %s3885_s14 = scalar_lea.vmem %s3884_s29, 512 }
 0x149   : > { %3517 = vmatpush3.bf16.msra.mxu1 %v3792_v59  ;;  %p3886_p6 = scmp.lt.s32.totalorder %s4526_s25, %s3884_s29  ;;  %p3887_p8 = scmp.lt.s32.totalorder %s3885_s14, %s3879_s19 }
 0x14a   : > { %3518 = vmatprep.subr.bf16.mxu1 %v4003_v43  ;;  %p3882_p4 = pneg %p3881_p3 }
 0x14b   : > { %3505 = vmatpush3.bf16.xpose.msra.mxu0 %v1421_v48  ;;  %p3888_p9 = por %p3887_p8, %p3886_p6 }
 0x14c   : > { %3506 = vmatprep.subr.bf16.mxu0 %v4003_v43 }
 0x14d   : > { %3519 = vmatpush3.bf16.msra.mxu1 %v3793_v60  ;;  %p3889_p10 = pnand %p3888_p9, %p3882_p4 }
 0x14e   : > { %3520 = vmatprep.subr.bf16.mxu1 %v4003_v43 }
 0x151   : > { %3521 = vmatpush3.bf16.msra.mxu1 %v3795_v62 }
 0x152   : > { %3526 = vmatprep.subr.bf16.mxu1 %v4003_v43 }
 0x153   : > { %3507 = vmatpush3.bf16.xpose.msra.mxu0 %v1418_v49 }
 0x154   : > { %3508 = vmatprep.subr.bf16.mxu0 %v4003_v43 }
 0x15b   : > { %3509 = vmatpush3.bf16.xpose.msra.mxu0 %v1415_v50 }
 0x15c   : > { %3538 = vmatprep.subr.bf16.mxu0 %v4003_v43 }
 0x162   : > { %3511 = vmatmul.mubr.msk.bf16.vlgmr.msra.gmra.mxu0 %vm1410_vm2, %v3790_v51 }
 0x163   : > { %3546 = vmatprep.mubr.msk.bf16.mxu0 %vm4004_vm3, %v4003_v43  ;;  %3539 = vmatpush3.bf16.msra.mxu0 %v3794_v61 }
 0x164   : > { %3540 = vmatprep.subr.bf16.mxu0 %v4003_v43 }
 0x167   : > { %3541 = vmatpush3.bf16.msra.mxu0 %v3796_v63 }
 0x168   : > { %3542 = vmatprep.subr.bf16.mxu0 %v4003_v43 }
 0x16b   : > { %3543 = vmatpush3.bf16.msra.mxu0 %v3797_v0 }
 0x16c   : > { %3544 = vmatprep.subr.bf16.mxu0 %v4003_v43 }
 0x16f   : > { %3545 = vmatpush3.bf16.msra.mxu0 %v3798_v1 }
 0x170   : > { %3558 = vmatprep.subr.bf16.mxu0 %v4003_v43 }
 0x172   : > { %3547 = vmatmul.mubr.msk.bf16.vlgmr.msra.gmra.mxu0 %vm1410_vm2, %v4346_v2 }
 0x173   : > { %3562 = vmatprep.mubr.msk.bf16.mxu0 %vm4004_vm3, %v4003_v43 }
 0x222   : > { %v1460_v52 = vpop.f32.mrf.mxu0 }
 0x223   : > { %v1467_v53 = vsel %vm1410_vm2, %v1460_v52, -inf }
 0x224   : > { %1468 = vmax.xlane.f32.xlu0 %v1467_v53  ;;  %v3512_v54 = vpop.f32.mrf.mxu0 }
 0x226   : > { %v1463_v55 = vpop.f32.mrf.mxu0 }
 0x227   : > { %v1470_v56 = vsel %vm1410_vm2, %v1463_v55, -inf }
 0x228   : > { %1471 = vmax.xlane.f32.xlu0 %v1470_v56  ;;  %v3513_v57 = vpop.f32.mrf.mxu0  ;;  %v3810_v56 = vld [vmem:[#allocation3] sm:$0xff]  }
 0x232   : > { %v1717_v18 = vpop.f32.mrf.mxu0 }
 0x234   : > { %v3548_v19 = vpop.f32.mrf.mxu0 }
 0x236   : > { %v1720_v20 = vpop.f32.mrf.mxu0 }
 0x237   : > { %v1724_v21 = vpack.c.bf16 %v1720_v20, %v1717_v18 }
 0x238   : > { %v3549_v22 = vpop.f32.mrf.mxu0 }
 0x239   : > { %v3813_v22 = vld [vmem:[#allocation3 + $0x18] sm:$0xff]  }
 0x2ad   : > { %v1469_v3 = vpop.xlane.xlu0 %1468 }
 0x2ae   : > { %v1473_v6 = vsub.f32 %v1460_v52, %v1469_v3 }
 0x2b0   : > { %v1475_v7 = vmul.f32 1.442695, %v1473_v6 }
 0x2b1   : > { %v1472_v8 = vpop.xlane.xlu0 %1471 }
 0x2b2   : > { %3831 = vpow2.f32 %v1475_v7  ;;  %v1474_v9 = vsub.f32 %v1463_v55, %v1472_v8  ;;  %v3809_v55 = vld [vmem:[#allocation3 + $0x8] sm:$0xff]   ;;  %v3811_v7 = vld [vmem:[#allocation2 + $0x18] sm:$0xff]  }
 0x2b3   : > { %3559 = vmatpush3.bf16.msra.mxu0 %v3809_v55 }
 0x2b4   : > { %v1477_v10 = vmul.f32 1.442695, %v1474_v9  ;;  %3560 = vmatprep.subr.bf16.mxu0 %v4003_v43 }
 0x2b6   : > { %3833 = vpow2.f32 %v1477_v10 }
 0x2b7   : > { %3561 = vmatpush3.bf16.msra.mxu0 %v3810_v56 }
 0x2b8   : > { %3578 = vmatprep.subr.bf16.mxu0 %v4003_v43 }
 0x2bf   : > { %v3832_v11 = vpop.eup %3831 }
 0x2c0   : > { %v1479_v4 = vsel %vm1410_vm2, %v3832_v11, 0.0 }
 0x2c1   : > { %1480 = vadd.xlane.f32.xlu1 %v1479_v4  ;;  %v3812_v4 = vld [vmem:[#allocation2 + $0x10] sm:$0xff]  }
 0x2c3   : > { %v3834_v5 = vpop.eup %3833 }
 0x2c4   : > { %v1482_v12 = vsel %vm1410_vm2, %v3834_v5, 0.0  ;;  %v1485_v13 = vpack.c.bf16 %v3834_v5, %v3832_v11 }
 0x2c5   : > { %1483 = vadd.xlane.f32.xlu1 %v1482_v12 }
 0x2c6   : > { %3523 = vmatmul.mubr.msk.bf16.vlgmr.msra.gmra.mxu1 %vm1410_vm2, %v1485_v13 }
 0x2c7   : > { %3534 = vmatprep.mubr.msk.bf16.mxu1 %vm4004_vm3, %v4003_v43  ;;  %3527 = vmatpush3.bf16.msra.mxu1 %v3799_v14 }
 0x2c8   : > { %3528 = vmatprep.subr.bf16.mxu1 %v4003_v43 }
 0x2cb   : > { %3529 = vmatpush3.bf16.msra.mxu1 %v3800_v15 }
 0x2cc   : > { %3530 = vmatprep.subr.bf16.mxu1 %v4003_v43 }
 0x2cf   : > { %3531 = vmatpush3.bf16.msra.mxu1 %v3801_v16 }
 0x2d0   : > { %3532 = vmatprep.subr.bf16.mxu1 %v4003_v43 }
 0x2d3   : > { %3533 = vmatpush3.bf16.msra.mxu1 %v3802_v17 }
 0x2d4   : > { %3550 = vmatprep.subr.bf16.mxu1 %v4003_v43 }
 0x34a   : > { %v1481_v23 = vpop.xlane.xlu1 %1480 }
 0x34b   : > { %3835 = vrcp.f32 %v1481_v23  ;;  %v3814_v23 = vld [vmem:[#allocation3 + $0x10] sm:$0xff]  }
 0x34e   : > { %v1484_v24 = vpop.xlane.xlu1 %1483 }
 0x34f   : > { %3837 = vrcp.f32 %v1484_v24 }
 0x358   : > { %v3836_v25 = vpop.eup %3835 }
 0x359   : > { %v1639_v26 = vmul.f32 %v3836_v25, %v3832_v11  ;;  %v1978_v11 = vsel %vm1743_vm4, %v3811_v7, 0  ;;  %v3820_v7 = vld [vmem:[#allocation2 + $0x20] sm:$0xff]  }
 0x35b   : > { %1641 = vst.msk [vmem:[%s4186_s12] sm:$0xff] %vm1410_vm2, %v1639_v26 }
 0x35c   : > { %v3838_v27 = vpop.eup %3837 }
 0x35d   : > { %v1640_v28 = vmul.f32 %v3838_v27, %v3834_v5  ;;  %v1975_v5 = vsel %vm1743_vm4, %v3812_v4, 0 }
 0x35f   : > { %1642 = vst.msk [vmem:[%s4186_s12 + $0x8] sm:$0xff] %vm1410_vm2, %v1640_v28 }
 0x386   : > { %v1547_v29 = vpop.f32.mrf.mxu1 }
 0x387   : > { %v1556_v33 = vmul.f32 %v3836_v25, %v1547_v29 }
 0x388   : > { %v3524_v30 = vpop.f32.mrf.mxu1 }
 0x38a   : > { %v1550_v32 = vpop.f32.mrf.mxu1 }
 0x38b   : > { %v1557_v34 = vmul.f32 %v3838_v27, %v1550_v32 }
 0x38c   : > { %v3525_v35 = vpop.f32.mrf.mxu1 }
 0x38d   : > { %v1558_v36 = vpack.c.bf16 %v1557_v34, %v1556_v33 }
 0x38f   : > { %3535 = vmatmul.mubr.msk.bf16.vlgmr.msra.gmra.mxu1 %vm1410_vm2, %v1558_v36 }
 0x390   : > { %3551 = vmatpush3.bf16.xpose.msra.mxu1 %v1751_v37  ;;  %3554 = vmatprep.mubr.msk.bf16.mxu1 %vm4004_vm3, %v4003_v43  ;;  %v1875_v37 = vld [vmem:[%s4174_s15] sm:$0xf] }
 0x391   : > { %3552 = vmatprep.subr.bf16.mxu1 %v4003_v43  ;;  %v2155_v38 = vsel %vm2106_vm6, %v1875_v37, 0 }
 0x398   : > { %3553 = vmatpush3.bf16.xpose.msra.mxu1 %v1748_v39  ;;  %v3198_v39 = vld [vmem:[%s4174_s15 + $0x4] sm:$0xf] }
 0x399   : > { %3566 = vmatprep.subr.bf16.mxu1 %v4003_v43 }
 0x39f   : > { %3555 = vmatmul.mubr.msk.bf16.vlgmr.msra.gmra.mxu1 %vm1743_vm4, %v1724_v21 }
 0x3a0   : > { %3567 = vmatpush3.bf16.msra.mxu1 %v3805_v40  ;;  %3574 = vmatprep.mubr.msk.bf16.mxu1 %vm4004_vm3, %v4003_v43  ;;  %v2108_v40 = vsel %vm2106_vm6, %v3198_v39, 0  ;;  %v3823_v39 = vld [vmem:[%s4154_s11 + $0x78] sm:$0xff]  }
 0x3a1   : > { %3568 = vmatprep.subr.bf16.mxu1 %v4003_v43 }
 0x3a4   : > { %3569 = vmatpush3.bf16.msra.mxu1 %v3806_v41 }
 0x3a5   : > { %3570 = vmatprep.subr.bf16.mxu1 %v4003_v43 }
 0x3a8   : > { %3571 = vmatpush3.bf16.msra.mxu1 %v3807_v42 }
 0x3a9   : > { %3572 = vmatprep.subr.bf16.mxu1 %v4003_v43 }
 0x3ac   : > { %3573 = vmatpush3.bf16.msra.mxu1 %v3808_v44 }
 0x3ad   : > { %3586 = vmatprep.subr.bf16.mxu1 %v4003_v43 }
 0x3af   : > { %3575 = vmatmul.mubr.msk.bf16.vlgmr.msra.gmra.mxu1 %vm1410_vm2, %v4346_v2 }
 0x3b0   : > { %3590 = vmatprep.mubr.msk.bf16.mxu1 %vm4004_vm3, %v4003_v43  ;;  %3587 = vmatpush3.bf16.msra.mxu1 %v3813_v22 }
 0x3b1   : > { %3588 = vmatprep.subr.bf16.mxu1 %v4003_v43 }
 0x3b4   : > { %3589 = vmatpush3.bf16.msra.mxu1 %v3814_v23 }
 0x3b5   : > { %3600 = vmatprep.subr.bf16.mxu1 %v4003_v43 }
 0x44f   : > { %v4400_v45 = vpop.f32.mrf.mxu1 }
 0x451   : > { %v3536_v46 = vpop.f32.mrf.mxu1 }
 0x453   : > { %v4402_v47 = vpop.f32.mrf.mxu1 }
 0x455   : > { %v3537_v48 = vpop.f32.mrf.mxu1 }
 0x45f   : > { %v1787_v49 = vpop.f32.mrf.mxu1 }
 0x460   : > { %v1795_v50 = vsel %vm1794_vm5, %v1787_v49, -inf }
 0x461   : > { %1796 = vmax.xlane.f32.xlu0 %v1795_v50  ;;  %v3556_v51 = vpop.f32.mrf.mxu1 }
 0x463   : > { %v1790_v52 = vpop.f32.mrf.mxu1 }
 0x464   : > { %v1798_v53 = vsel %vm1794_vm5, %v1790_v52, -inf }
 0x465   : > { %1799 = vmax.xlane.f32.xlu1 %v1798_v53  ;;  %v3557_v54 = vpop.f32.mrf.mxu1 }
 0x46f   : > { %v1943_v57 = vpop.f32.mrf.mxu1 }
 0x471   : > { %v3576_v58 = vpop.f32.mrf.mxu1 }
 0x473   : > { %v1946_v59 = vpop.f32.mrf.mxu1 }
 0x474   : > { %v1950_v60 = vpack.c.bf16 %v1946_v59, %v1943_v57 }
 0x475   : > { %v3577_v61 = vpop.f32.mrf.mxu1 }
 0x476   : > { %v3815_v61 = vld [vmem:[%s4154_s11 + $0x58] sm:$0xff]  }
 0x4ea   : > { %v1797_v62 = vpop.xlane.xlu0 %1796 }
 0x4eb   : > { %v1801_v63 = vsub.f32 %v1787_v49, %v1797_v62 }
 0x4ed   : > { %v1803_v0 = vmul.f32 1.442695, %v1801_v63  ;;  %v3816_v63 = vld [vmem:[%s4154_s11 + $0x50] sm:$0xff]  }
 0x4ee   : > { %v1800_v1 = vpop.xlane.xlu1 %1799 }
 0x4ef   : > { %v1802_v3 = vsub.f32 %v1790_v52, %v1800_v1  ;;  %3839 = vpow2.f32 %v1803_v0  ;;  %v3817_v0 = vld [vmem:[%s4154_s11 + $0x48] sm:$0xff]   ;;  %v3818_v1 = vld [vmem:[%s4154_s11 + $0x40] sm:$0xff]  }
 0x4f1   : > { %v1805_v6 = vmul.f32 1.442695, %v1802_v3  ;;  %v3819_v3 = vld [vmem:[#allocation2 + $0x28] sm:$0xff]  }
 0x4f3   : > { %3841 = vpow2.f32 %v1805_v6  ;;  %v2300_v6 = vsel %vm1743_vm4, %v3819_v3, 0 }
 0x4fc   : > { %v3840_v8 = vpop.eup %3839 }
 0x4fd   : > { %v1807_v33 = vsel %vm1794_vm5, %v3840_v8, 0.0 }
 0x500   : > { %v3842_v9 = vpop.eup %3841 }
 0x501   : > { %v1813_v10 = vpack.c.bf16 %v3842_v9, %v3840_v8  ;;  %v1810_v36 = vsel %vm1794_vm5, %v3842_v9, 0.0  ;;  %v2297_v8 = vsel %vm1743_vm4, %v3820_v7, 0 }
 0x503   : > { %3563 = vmatmul.mubr.msk.bf16.vlgmr.msra.gmra.mxu0 %vm1794_vm5, %v1813_v10 }
 0x504   : > { %3579 = vmatpush3.bf16.xpose.msra.mxu0 %v1978_v11  ;;  %3582 = vmatprep.mubr.msk.bf16.mxu0 %vm4004_vm3, %v4003_v43 }
 0x505   : > { %3580 = vmatprep.subr.bf16.mxu0 %v4003_v43 }
 0x50c   : > { %3581 = vmatpush3.bf16.xpose.msra.mxu0 %v1975_v5 }
 0x50d   : > { %3594 = vmatprep.subr.bf16.mxu0 %v4003_v43 }
 0x513   : > { %3583 = vmatmul.mubr.msk.bf16.vlgmr.msra.gmra.mxu0 %vm1743_vm4, %v1950_v60 }
 0x514   : > { %3596 = vmatprep.mubr.msk.bf16.mxu0 %vm4004_vm3, %v4003_v43  ;;  %3595 = vmatpush3.bf16.msra.mxu0 %v2108_v40 }
 0x515   : > { %3606 = vmatprep.subr.bf16.mxu0 %v4003_v43 }
 0x5c3   : > { %v1863_v12 = vpop.f32.mrf.mxu0 }
 0x5c5   : > { %v3564_v13 = vpop.f32.mrf.mxu0 }
 0x5c7   : > { %v1866_v14 = vpop.f32.mrf.mxu0 }
 0x5c9   : > { %v3565_v15 = vpop.f32.mrf.mxu0 }
 0x5d3   : > { %v2014_v16 = vpop.f32.mrf.mxu0 }
 0x5d4   : > { %v2021_v17 = vsel %vm1794_vm5, %v2014_v16, -inf }
 0x5d5   : > { %2022 = vmax.xlane.f32.xlu0 %v2021_v17  ;;  %v3584_v18 = vpop.f32.mrf.mxu0 }
 0x5d7   : > { %v2017_v19 = vpop.f32.mrf.mxu0 }
 0x5d8   : > { %v2024_v20 = vsel %vm1794_vm5, %v2017_v19, -inf }
 0x5d9   : > { %2025 = vmax.xlane.f32.xlu1 %v2024_v20  ;;  %v3585_v21 = vpop.f32.mrf.mxu0 }
 0x65e   : > { %v2023_v24 = vpop.xlane.xlu0 %2022 }
 0x65f   : > { %v2027_v25 = vsub.f32 %v2014_v16, %v2023_v24 }
 0x661   : > { %v2029_v26 = vmul.f32 1.442695, %v2027_v25 }
 0x662   : > { %v2026_v27 = vpop.xlane.xlu1 %2025 }
 0x663   : > { %3843 = vpow2.f32 %v2029_v26  ;;  %v2028_v28 = vsub.f32 %v2017_v19, %v2026_v27 }
 0x665   : > { %v2031_v29 = vmul.f32 1.442695, %v2028_v28  ;;  %v3821_v28 = vld [vmem:[#allocation3 + $0x28] sm:$0xff]  }
 0x667   : > { %3845 = vpow2.f32 %v2031_v29  ;;  %v3822_v29 = vld [vmem:[#allocation3 + $0x20] sm:$0xff]  }
 0x670   : > { %v3844_v30 = vpop.eup %3843 }
 0x671   : > { %v2033_v31 = vsel %vm1794_vm5, %v3844_v30, 0.0 }
 0x672   : > { %2034 = vadd.xlane.f32.xlu0 %v2033_v31 }
 0x674   : > { %v3846_v32 = vpop.eup %3845 }
 0x675   : > { %v2036_v34 = vsel %vm1794_vm5, %v3846_v32, 0.0  ;;  %v2039_v35 = vpack.c.bf16 %v3846_v32, %v3844_v30 }
 0x676   : > { %1808 = vadd.xlane.f32.xlu0 %v1807_v33  ;;  %2037 = vadd.xlane.f32.xlu1 %v2036_v34 }
 0x677   : > { %3591 = vmatmul.mubr.msk.bf16.vlgmr.msra.gmra.mxu1 %vm1794_vm5, %v2039_v35 }
 0x678   : > { %3602 = vmatprep.mubr.msk.bf16.mxu1 %vm4004_vm3, %v4003_v43  ;;  %3601 = vmatpush3.bf16.msra.mxu1 %v2155_v38 }
 0x679   : > { %3618 = vmatprep.subr.bf16.mxu1 %v4003_v43 }
 0x67a   : > { %1811 = vadd.xlane.f32.xlu1 %v1810_v36 }
 0x6fb   : > { %v2035_v41 = vpop.xlane.xlu0 %2034 }
 0x6ff   : > { %v1809_v42 = vpop.xlane.xlu0 %1808  ;;  %v2038_v44 = vpop.xlane.xlu1 %2037 }
 0x700   : > { %3847 = vrcp.f32 %v1809_v42  ;;  %v3824_v42 = vld [vmem:[%s4154_s11 + $0x70] sm:$0xff]  }
 0x703   : > { %v1812_v46 = vpop.xlane.xlu1 %1811 }
 0x704   : > { %3849 = vrcp.f32 %v1812_v46  ;;  %v3826_v46 = vld [vmem:[%s4154_s11 + $0x60] sm:$0xff]  }
 0x705   : > { %3851 = vrcp.f32 %v2035_v41 }
 0x706   : > { %3853 = vrcp.f32 %v2038_v44  ;;  %v3825_v44 = vld [vmem:[%s4154_s11 + $0x68] sm:$0xff]   ;;  %s3289_s11 = sshll.u32 %s4143_s30, 8 }
 0x707   : > { %s4523_s23 = scalar_lea.hbm %s4665_s0, %s3289_s11 }
 0x70d   : > { %v3848_v48 = vpop.eup %3847 }
 0x70e   : > { %v1872_v50 = vmul.f32 %v3848_v48, %v1863_v12  ;;  %v3220_v48 = vld [vmem:[%s4174_s15 + $0x8] sm:$0xf] }
 0x711   : > { %v3850_v49 = vpop.eup %3849 }
 0x712   : > { %v1873_v51 = vmul.f32 %v3850_v49, %v1866_v14  ;;  %v3852_v55 = vpop.eup %3851  ;;  %v2429_v49 = vsel %vm2106_vm6, %v3220_v48, 0 }
 0x713   : > { %v3854_v56 = vpop.eup %3853 }
 0x714   : > { %v1874_v52 = vpack.c.bf16 %v1873_v51, %v1872_v50 }
 0x716   : > { %3603 = vmatmul.mubr.msk.bf16.vlgmr.msra.gmra.mxu1 %vm1743_vm4, %v1874_v52 }
 0x717   : > { %3622 = vmatprep.mubr.msk.bf16.mxu1 %vm4004_vm3, %v4003_v43  ;;  %3619 = vmatpush3.bf16.xpose.msra.mxu1 %v2300_v6 }
 0x718   : > { %3620 = vmatprep.subr.bf16.mxu1 %v4003_v43 }
 0x71f   : > { %3621 = vmatpush3.bf16.xpose.msra.mxu1 %v2297_v8 }
 0x720   : > { %3634 = vmatprep.subr.bf16.mxu1 %v4003_v43 }
 0x737   : > { %v2089_v53 = vpop.f32.mrf.mxu1 }
 0x738   : > { %v2098_v58 = vmul.f32 %v3852_v55, %v2089_v53  ;;  %v3827_v55 = vld [vmem:[#allocation2 + $0x38] sm:$0xff]  }
 0x739   : > { %v3592_v54 = vpop.f32.mrf.mxu1 }
 0x73b   : > { %v2092_v57 = vpop.f32.mrf.mxu1 }
 0x73c   : > { %v2099_v59 = vmul.f32 %v3854_v56, %v2092_v57 }
 0x73d   : > { %v3593_v60 = vpop.f32.mrf.mxu1 }
 0x73e   : > { %v2100_v62 = vpack.c.bf16 %v2099_v59, %v2098_v58 }
 0x740   : > { %3597 = vmatmul.mubr.msk.bf16.vlgmr.msra.gmra.mxu0 %vm1743_vm4, %v2100_v62  ;;  %v3828_v62 = vld [vmem:[#allocation2 + $0x30] sm:$0xff]  }
 0x741   : > { %3607 = vmatpush3.bf16.msra.mxu0 %v3815_v61  ;;  %3614 = vmatprep.mubr.msk.bf16.mxu0 %vm4004_vm3, %v4003_v43  ;;  %v2576_v61 = vsel %vm1743_vm4, %v3827_v55, 0 }
 0x742   : > { %3608 = vmatprep.subr.bf16.mxu0 %v4003_v43 }
 0x745   : > { %3609 = vmatpush3.bf16.msra.mxu0 %v3816_v63  ;;  %v2573_v63 = vsel %vm1743_vm4, %v3828_v62, 0 }
 0x746   : > { %3610 = vmatprep.subr.bf16.mxu0 %v4003_v43 }
 0x749   : > { %3611 = vmatpush3.bf16.msra.mxu0 %v3817_v0 }
 0x74a   : > { %3612 = vmatprep.subr.bf16.mxu0 %v4003_v43 }
 0x74d   : > { %3613 = vmatpush3.bf16.msra.mxu0 %v3818_v1 }
 0x74e   : > { %3626 = vmatprep.subr.bf16.mxu0 %v4003_v43 }
 0x750   : > { %3615 = vmatmul.mubr.msk.bf16.vlgmr.msra.gmra.mxu0 %vm1410_vm2, %v4346_v2 }
 0x751   : > { %3630 = vmatprep.mubr.msk.bf16.mxu0 %vm4004_vm3, %v4003_v43  ;;  %3627 = vmatpush3.bf16.msra.mxu0 %v3821_v28 }
 0x752   : > { %3628 = vmatprep.subr.bf16.mxu0 %v4003_v43 }
 0x755   : > { %3629 = vmatpush3.bf16.msra.mxu0 %v3822_v29 }
 0x756   : > { %3640 = vmatprep.subr.bf16.mxu0 %v4003_v43 }
 0x7d6   : > { %v2191_v9 = vpop.f32.mrf.mxu1 }
 0x7d8   : > { %v3604_v10 = vpop.f32.mrf.mxu1 }
 0x7da   : > { %v2194_v11 = vpop.f32.mrf.mxu1 }
 0x7dc   : > { %v3605_v4 = vpop.f32.mrf.mxu1 }
 0x800   : > { %v2144_v5 = vpop.f32.mrf.mxu0 }
 0x801   : > { %v4457_v12 = vadd.f32 %v2191_v9, %v2144_v5 }
 0x802   : > { %v3598_v13 = vpop.f32.mrf.mxu0 }
 0x804   : > { %v2147_v14 = vpop.f32.mrf.mxu0 }
 0x805   : > { %v4459_v15 = vadd.f32 %v2194_v11, %v2147_v14 }
 0x806   : > { %v3599_v16 = vpop.f32.mrf.mxu0 }
 0x810   : > { %v2265_v17 = vpop.f32.mrf.mxu0 }
 0x812   : > { %v3616_v18 = vpop.f32.mrf.mxu0 }
 0x814   : > { %v2268_v19 = vpop.f32.mrf.mxu0 }
 0x815   : > { %v2272_v20 = vpack.c.bf16 %v2268_v19, %v2265_v17 }
 0x816   : > { %v3617_v21 = vpop.f32.mrf.mxu0 }
 0x817   : > { %3623 = vmatmul.mubr.msk.bf16.vlgmr.msra.gmra.mxu1 %vm1743_vm4, %v2272_v20  ;;  %v3829_v20 = vld [vmem:[#allocation3 + $0x38] sm:$0xff]  }
 0x818   : > { %3636 = vmatprep.mubr.msk.bf16.mxu1 %vm4004_vm3, %v4003_v43  ;;  %3635 = vmatpush3.bf16.msra.mxu1 %v2429_v49 }
 0x819   : > { %3652 = vmatprep.subr.bf16.mxu1 %v4003_v43 }
 0x8d7   : > { %v2336_v22 = vpop.f32.mrf.mxu1 }
 0x8d8   : > { %v2343_v23 = vsel %vm1794_vm5, %v2336_v22, -inf }
 0x8d9   : > { %2344 = vmax.xlane.f32.xlu0 %v2343_v23  ;;  %v3624_v24 = vpop.f32.mrf.mxu1 }
 0x8db   : > { %v2339_v25 = vpop.f32.mrf.mxu1 }
 0x8dc   : > { %v2346_v26 = vsel %vm1794_vm5, %v2339_v25, -inf }
 0x8dd   : > { %2347 = vmax.xlane.f32.xlu1 %v2346_v26  ;;  %v3625_v27 = vpop.f32.mrf.mxu1 }
 0x8de   : > { %v2750_v27 = vmul.f32 %v4400_v45, %v4400_v45 }
 0x962   : > { %v2345_v30 = vpop.xlane.xlu0 %2344 }
 0x963   : > { %v2349_v31 = vsub.f32 %v2336_v22, %v2345_v30  ;;  %v2752_v30 = vsel %vm1410_vm2, %v2750_v27, 0.0 }
 0x965   : > { %v2351_v32 = vmul.f32 1.442695, %v2349_v31 }
 0x966   : > { %v2348_v33 = vpop.xlane.xlu1 %2347 }
 0x967   : > { %3855 = vpow2.f32 %v2351_v32  ;;  %v2350_v34 = vsub.f32 %v2339_v25, %v2348_v33 }
 0x969   : > { %v2353_v35 = vmul.f32 1.442695, %v2350_v34  ;;  %v3241_v34 = vld [vmem:[%s4174_s15 + $0xc] sm:$0xf] }
 0x96b   : > { %3857 = vpow2.f32 %v2353_v35  ;;  %v2705_v35 = vsel %vm2106_vm6, %v3241_v34, 0 }
 0x974   : > { %v3856_v36 = vpop.eup %3855 }
 0x975   : > { %v2355_v37 = vsel %vm1794_vm5, %v3856_v36, 0.0 }
 0x976   : > { %2356 = vadd.xlane.f32.xlu0 %v2355_v37 }
 0x978   : > { %v3858_v38 = vpop.eup %3857 }
 0x979   : > { %v2358_v40 = vsel %vm1794_vm5, %v3858_v38, 0.0  ;;  %v2361_v41 = vpack.c.bf16 %v3858_v38, %v3856_v36 }
 0x97a   : > { %2359 = vadd.xlane.f32.xlu1 %v2358_v40 }
 0x97b   : > { %3631 = vmatmul.mubr.msk.bf16.vlgmr.msra.gmra.mxu0 %vm1794_vm5, %v2361_v41 }
 0x97c   : > { %3641 = vmatpush3.bf16.msra.mxu0 %v3823_v39  ;;  %3648 = vmatprep.mubr.msk.bf16.mxu0 %vm4004_vm3, %v4003_v43 }
 0x97d   : > { %3642 = vmatprep.subr.bf16.mxu0 %v4003_v43 }
 0x980   : > { %3643 = vmatpush3.bf16.msra.mxu0 %v3824_v42 }
 0x981   : > { %3644 = vmatprep.subr.bf16.mxu0 %v4003_v43 }
 0x984   : > { %3645 = vmatpush3.bf16.msra.mxu0 %v3825_v44 }
 0x985   : > { %3646 = vmatprep.subr.bf16.mxu0 %v4003_v43 }
 0x988   : > { %3647 = vmatpush3.bf16.msra.mxu0 %v3826_v46 }
 0x989   : > { %3660 = vmatprep.subr.bf16.mxu0 %v4003_v43 }
 0x98b   : > { %3649 = vmatmul.mubr.msk.bf16.vlgmr.msra.gmra.mxu0 %vm1410_vm2, %v4346_v2 }
 0x98c   : > { %3664 = vmatprep.mubr.msk.bf16.mxu0 %vm4004_vm3, %v4003_v43  ;;  %3661 = vmatpush3.bf16.msra.mxu0 %v3829_v20 }
 0x98d   : > { %3662 = vmatprep.subr.bf16.mxu0 %v4003_v43 }
 0x9ff   : > { %v2357_v50 = vpop.xlane.xlu0 %2356 }
 0xa00   : > { %3859 = vrcp.f32 %v2357_v50 }
 0xa03   : > { %v2360_v51 = vpop.xlane.xlu1 %2359 }
 0xa04   : > { %3861 = vrcp.f32 %v2360_v51 }
 0xa0d   : > { %v3860_v54 = vpop.eup %3859 }
 0xa11   : > { %v3862_v56 = vpop.eup %3861 }
 0xa3b   : > { %v2411_v52 = vpop.f32.mrf.mxu0 }
 0xa3c   : > { %v2420_v2 = vmul.f32 %v3860_v54, %v2411_v52 }
 0xa3d   : > { %v3632_v53 = vpop.f32.mrf.mxu0 }
 0xa3f   : > { %v2414_v57 = vpop.f32.mrf.mxu0 }
 0xa40   : > { %v2421_v58 = vmul.f32 %v3862_v56, %v2414_v57 }
 0xa41   : > { %v3633_v59 = vpop.f32.mrf.mxu0 }
 0xa42   : > { %v2422_v60 = vpack.c.bf16 %v2421_v58, %v2420_v2 }
 0xa44   : > { %3637 = vmatmul.mubr.msk.bf16.vlgmr.msra.gmra.mxu1 %vm1743_vm4, %v2422_v60 }
 0xa45   : > { %3653 = vmatpush3.bf16.xpose.msra.mxu1 %v2576_v61  ;;  %3656 = vmatprep.mubr.msk.bf16.mxu1 %vm4004_vm3, %v4003_v43 }
 0xa46   : > { %3654 = vmatprep.subr.bf16.mxu1 %v4003_v43 }
 0xa4b   : > { %v2541_v0 = vpop.f32.mrf.mxu0 }
 0xa4d   : > { %v3650_v1 = vpop.f32.mrf.mxu0  ;;  %3655 = vmatpush3.bf16.xpose.msra.mxu1 %v2573_v63 }
 0xa4e   : > { %3668 = vmatprep.subr.bf16.mxu1 %v4003_v43 }
 0xa4f   : > { %v2544_v3 = vpop.f32.mrf.mxu0 }
 0xa50   : > { %v2548_v7 = vpack.c.bf16 %v2544_v3, %v2541_v0 }
 0xa51   : > { %v3651_v6 = vpop.f32.mrf.mxu0 }
 0xa54   : > { %3657 = vmatmul.mubr.msk.bf16.vlgmr.msra.gmra.mxu1 %vm1743_vm4, %v2548_v7 }
 0xa55   : > { %3670 = vmatprep.mubr.msk.bf16.mxu1 %vm4004_vm3, %v4003_v43  ;;  %v2751_v43 = vmul.f32 %v4402_v47, %v4402_v47  ;;  %3669 = vmatpush3.bf16.msra.mxu1 %v2705_v35 }
 0xa57   : > { %v2755_v33 = vsel %vm1410_vm2, %v2751_v43, 0.0 }
 0xb04   : > { %v2465_v8 = vpop.f32.mrf.mxu1 }
 0xb05   : > { %v2472_v9 = vadd.f32 %v2465_v8, %v4457_v12  ;;  %v3830_v12 = vld [vmem:[#allocation3 + $0x30] sm:$0xff]  }
 0xb06   : > { %v3638_v10 = vpop.f32.mrf.mxu1  ;;  %3663 = vmatpush3.bf16.msra.mxu0 %v3830_v12 }
 0xb08   : > { %v2468_v11 = vpop.f32.mrf.mxu1 }
 0xb09   : > { %v2473_v4 = vadd.f32 %v2468_v11, %v4459_v15 }
 0xb0a   : > { %v3639_v5 = vpop.f32.mrf.mxu1 }
 0xb14   : > { %v2612_v13 = vpop.f32.mrf.mxu1 }
 0xb15   : > { %v2619_v14 = vsel %vm1794_vm5, %v2612_v13, -inf }
 0xb16   : > { %2620 = vmax.xlane.f32.xlu0 %v2619_v14  ;;  %v3658_v16 = vpop.f32.mrf.mxu1 }
 0xb18   : > { %v2615_v17 = vpop.f32.mrf.mxu1 }
 0xb19   : > { %v2622_v18 = vsel %vm1794_vm5, %v2615_v17, -inf }
 0xb1a   : > { %2623 = vmax.xlane.f32.xlu1 %v2622_v18  ;;  %v3659_v19 = vpop.f32.mrf.mxu1 }
 0xb9f   : > { %v2621_v21 = vpop.xlane.xlu0 %2620 }
 0xba0   : > { %v2625_v22 = vsub.f32 %v2612_v13, %v2621_v21 }
 0xba2   : > { %v2627_v15 = vmul.f32 1.442695, %v2625_v22 }
 0xba3   : > { %v2624_v23 = vpop.xlane.xlu1 %2623 }
 0xba4   : > { %3863 = vpow2.f32 %v2627_v15  ;;  %v2626_v24 = vsub.f32 %v2615_v17, %v2624_v23 }
 0xba6   : > { %v2629_v25 = vmul.f32 1.442695, %v2626_v24 }
 0xba8   : > { %3865 = vpow2.f32 %v2629_v25 }
 0xbb1   : > { %v3864_v26 = vpop.eup %3863 }
 0xbb2   : > { %v2631_v28 = vsel %vm1794_vm5, %v3864_v26, 0.0 }
 0xbb3   : > { %2632 = vadd.xlane.f32.xlu0 %v2631_v28 }
 0xbb5   : > { %v3866_v29 = vpop.eup %3865 }
 0xbb6   : > { %v2634_v31 = vsel %vm1794_vm5, %v3866_v29, 0.0  ;;  %v2637_v32 = vpack.c.bf16 %v3866_v29, %v3864_v26 }
 0xbb7   : > { %2753 = vadd.xlane.f32.xlu0 %v2752_v30  ;;  %2635 = vadd.xlane.f32.xlu1 %v2634_v31 }
 0xbb8   : > { %3665 = vmatmul.mubr.msk.bf16.vlgmr.msra.gmra.mxu0 %vm1794_vm5, %v2637_v32 }
 0xbbb   : > { %2756 = vadd.xlane.f32.xlu1 %v2755_v33 }
 0xc3c   : > { %v2633_v36 = vpop.xlane.xlu0 %2632 }
 0xc3d   : > { %3867 = vrcp.f32 %v2633_v36 }
 0xc40   : > { %v2636_v37 = vpop.xlane.xlu1 %2635 }
 0xc41   : > { %3869 = vrcp.f32 %v2636_v37 }
 0xc4a   : > { %v3868_v40 = vpop.eup %3867 }
 0xc4e   : > { %v3870_v41 = vpop.eup %3869 }
 0xc78   : > { %v2687_v38 = vpop.f32.mrf.mxu0 }
 0xc79   : > { %v2696_v44 = vmul.f32 %v3868_v40, %v2687_v38 }
 0xc7a   : > { %v3666_v39 = vpop.f32.mrf.mxu0 }
 0xc7c   : > { %v2690_v42 = vpop.f32.mrf.mxu0 }
 0xc7d   : > { %v2697_v46 = vmul.f32 %v3870_v41, %v2690_v42 }
 0xc7e   : > { %v3667_v48 = vpop.f32.mrf.mxu0 }
 0xc7f   : > { %v2698_v49 = vpack.c.bf16 %v2697_v46, %v2696_v44 }
 0xc81   : > { %3671 = vmatmul.mubr.msk.bf16.vlgmr.msra.gmra.mxu1 %vm1743_vm4, %v2698_v49 }
 0xd41   : > { %v2741_v50 = vpop.f32.mrf.mxu1 }
 0xd42   : > { %v2748_v51 = vadd.f32 %v2741_v50, %v2472_v9 }
 0xd43   : > { %v3672_v52 = vpop.f32.mrf.mxu1 }
 0xd44   : > { %v2764_v53 = vmul.f32 %v2748_v51, %v2748_v51 }
 0xd45   : > { %v2744_v54 = vpop.f32.mrf.mxu1 }
 0xd46   : > { %v2749_v55 = vadd.f32 %v2744_v54, %v2473_v4  ;;  %v2766_v56 = vsel %vm1410_vm2, %v2764_v53, 0.0 }
 0xd47   : > { %2767 = vadd.xlane.f32.xlu0 %v2766_v56  ;;  %v3673_v57 = vpop.f32.mrf.mxu1 }
 0xd48   : > { %v2765_v2 = vmul.f32 %v2749_v55, %v2749_v55 }
 0xd4a   : > { %v2769_v58 = vsel %vm1410_vm2, %v2765_v2, 0.0 }
 0xd4b   : > { %2770 = vadd.xlane.f32.xlu1 %v2769_v58 }
 0xd4c   : > { %3892 = shalt.err (!%p3889_p10)
}
 0xd4d   : > { %s3893_s12 = scalar_lea.hbm %s4523_s23, 256  ;;  %s3897_s9 = scalar_lea.hbm %s4665_s0, 1024 }
 0xd4e   : > { %p3894_p11 = scmp.ne.s32.totalorder %s4523_s23, %s3893_s12  ;;  %p3898_p0 = scmp.lt.s32.totalorder %s4523_s23, %s4665_s0 }
 0xd4f   : > { %p3899_p1 = scmp.lt.s32.totalorder %s3897_s9, %s3893_s12 }
 0xd50   : > { %p3895_p12 = pnand %p3894_p11, %p4117_p5 }
 0xd51   : > { %p3900_p2 = por %p3899_p1, %p3898_p0 }
 0xd52   : > { %p3896_p13 = pneg %p3895_p12 }
 0xd54   : > { %p3901_p3 = pnand %p3900_p2, %p3896_p13 }
 0xd56   : > { %3904 = shalt.err (!%p3901_p3)
}
 0xd57   : > { %s4006_s16 = smov 128   ;;  %s4007_s18 = smov 8   ;;  %v2754_v59 = vpop.xlane.xlu0 %2753  ;;  %v2757_v61 = vpop.xlane.xlu1 %2756 }
 0xd58   : > { %3675 = dma.vmem_to_hbm [thread:$0]  (%p4117_p5), %s4526_s25, 256, %s4523_s23, %s2788_s17, %s4006_s16, %s4006_s16, %s4007_s18   ;;  %v2758_v60 = vmax.f32 %v2754_v59, 1e-24  ;;  %v2759_v63 = vmax.f32 %v2757_v61, 1e-24 }
 0xd59   : > { %s2803_s20 = sshll.u32 %s4182_s28, 4  ;;  %s4666_s23 = sld [smem:[#allocation22_spill]]  ;;  %s4566_s20 = int_to_ptr.vmem [resolvable:$true] %s2803_s20 }
 0xd5a   : > { %3871 = vrsqrt.f32 %v2758_v60  ;;  %s2783_s17 = scalar_lea.sflag [#allocation5], %s4136_s24  ;;  %s3905_s19 = scalar_lea.vmem %s4566_s20, 256 }
 0xd5b   : > { %p3906_p4 = scmp.ne.s32.totalorder %s4566_s20, %s3905_s19  ;;  %s4008_s21 = smov [#allocation4]  }
 0xd5c   : > { %s3909_s30 = sshll.u32 %s4008_s21, 4  ;;  %s3910_s30 = int_to_ptr.vmem [resolvable:$false] %s3909_s30 }
 0xd5d   : > { %p3907_p6 = pnand %p3906_p4, %p4117_p5  ;;  %s3911_s29 = scalar_lea.vmem %s3910_s30, 512 }
 0xd5e   : > { %p3912_p9 = scmp.lt.s32.totalorder %s4566_s20, %s3910_s30  ;;  %p3913_p10 = scmp.lt.s32.totalorder %s3911_s29, %s3905_s19 }
 0xd5f   : > { %s4564_s25 = scalar_lea.hbm %s4666_s23, %s3289_s11  ;;  %p3908_p8 = pneg %p3907_p6 }
 0xd60   : > { %p3914_p11 = por %p3913_p10, %p3912_p9 }
 0xd62   : > { %p3915_p12 = pnand %p3914_p11, %p3908_p8 }
 0xd67   : > { %v3872_v6 = vpop.eup %3871 }
 0xd68   : > { %v2762_v8 = vmul.f32 %v3872_v6, %v4400_v45 }
 0xdd0   : > { %v2768_v62 = vpop.xlane.xlu0 %2767 }
 0xdd1   : > { %v2772_v0 = vmax.f32 %v2768_v62, 1e-24 }
 0xdd3   : > { %3873 = vrsqrt.f32 %v2772_v0 }
 0xdd4   : > { %v2771_v1 = vpop.xlane.xlu1 %2770  ;;  %3875 = vrsqrt.f32 %v2759_v63 }
 0xdd5   : > { %v2773_v3 = vmax.f32 %v2771_v1, 1e-24 }
 0xdd7   : > { %3877 = vrsqrt.f32 %v2773_v3 }
 0xde0   : > { %v3874_v7 = vpop.eup %3873 }
 0xde1   : > { %v2776_v9 = vmul.f32 %v3874_v7, %v2748_v51  ;;  %v3876_v10 = vpop.eup %3875 }
 0xde2   : > { %v2763_v5 = vmul.f32 %v3876_v10, %v4402_v47 }
 0xde3   : > { %v2778_v11 = vadd.f32 %v2776_v9, %v2762_v8 }
 0xde4   : > { %v3878_v4 = vpop.eup %3877 }
 0xde5   : > { %v2777_v13 = vmul.f32 %v3878_v4, %v2749_v55  ;;  %2780 = vst.msk [vmem:[%s4182_s28] sm:$0xff] %vm1410_vm2, %v2778_v11 }
 0xde7   : > { %v2779_v14 = vadd.f32 %v2777_v13, %v2763_v5 }
 0xde9   : > { %2781 = vst.msk [vmem:[%s4182_s28 + $0x8] sm:$0xff] %vm1410_vm2, %v2779_v14 }
 0xdea   : > { %3918 = shalt.err (!%p3915_p12)
}
 0xdeb   : > { %s3919_s28 = scalar_lea.hbm %s4564_s25, 256  ;;  %s3923_s14 = scalar_lea.hbm %s4666_s23, 1024 }
 0xdec   : > { %p3920_p13 = scmp.ne.s32.totalorder %s4564_s25, %s3919_s28  ;;  %p3924_p2 = scmp.lt.s32.totalorder %s4564_s25, %s4666_s23 }
 0xded   : > { %p3925_p3 = scmp.lt.s32.totalorder %s3923_s14, %s3919_s28 }
 0xdee   : > { %p3921_p0 = pnand %p3920_p13, %p4117_p5 }
 0xdef   : > { %p3926_p4 = por %p3925_p3, %p3924_p2 }
 0xdf0   : > { %p3922_p1 = pneg %p3921_p0 }
 0xdf2   : > { %p3927_p6 = pnand %p3926_p4, %p3922_p1 }
 0xdf4   : > { %3930 = shalt.err (!%p3927_p6)
}
 0xdf5   : > { %3674 = dma.vmem_to_hbm [thread:$0]  (%p4117_p5), %s4566_s20, 256, %s4564_s25, %s2783_s17, %s4006_s16, %s4006_s16, %s4007_s18  }
 0xdf6 PF: > { %s4667_s5 = sld [smem:[#allocation15_spill]] }
 0xdf7   : > { %s4668_s9 = sld [smem:[#allocation10_spill]] }
 0xdfc   : > { %p3685_p8 = scmp.ge.s32.totalorder %s4667_s5, 2 }
 0xdfd   : > { %s2836_s13 = sand.u32 1, %s4668_s9  }
 0xdfe   : > { %p3679_p9 = pnand %p3685_p8, %p4123_p7  ;;  %s2837_s15 = scalar_lea.sflag [#allocation5], %s2836_s13 }
 0xe00   : > { %p3680_p10 = pneg %p3679_p9 }
 0xe02   : > { %3964 = dma.done.wait (%p3680_p10), %s2837_s15, 256  }
 0xe03   : > { %3966 = vsyncadd (%p3680_p10), %s2837_s15, 4294967040  ;;  %s2846_s22 = scalar_lea.sflag [#allocation7], %s2836_s13 }
 0xe04   : > { %3968 = dma.done.wait (%p3680_p10), %s2846_s22, 256  }
 0xe05   : > { %3970 = vsyncadd (%p3680_p10), %s2846_s22, 4294967040  ;;  %s27_s20 = sadd.s32 1, %s4667_s5   ;;  %s4670_s13 = sld [smem:[#allocation11_spill]] }
 0xe06   : > { %p24_p11 = scmp.ge.s32.totalorder %s27_s20, 6   ;;  %s4671_s14 = sld [smem:[#allocation12_spill]] }
 0xe07   : > { %s4672_s15 = sld [smem:[#allocation19_spill]] }
 0xe08   : > { %s4673_s16 = sld [smem:[#allocation13_spill]]  ;;  %26 = sbr.rel (!%p24_p11) target bundleno = 12 (0xc), region = 152 }
 0xe09   : > { %s4674_s17 = sld [smem:[#allocation14_spill]] }
 0xe0a   : > { %s4675_s18 = sld [smem:[#allocation16_spill]] }
 0xe0b   : > { %s4676_s19 = sld [smem:[#allocation17_spill]] }
 0xe0d   :  { %2851 = vsyncpa [#allocation5], 1 }
 0xe0e   :  { %2853 = vsyncpa [#allocation5 + $0x1], 1 }
 0xe0f   :  { %2854 = vsyncpa [#allocation7], 1 }
 0xe10   :  { %2856 = vsyncpa [#allocation7 + $0x1], 1 }

</bundles_post_ra>
